<compile_context>
chip_gen: v6e
topology: v6e:2x2x1
jax: 0.10.0
libtpu: 0.0.40
codegen_flags: <defaults>
</compile_context>

<pallas_src>
import functools

import numpy as np
import jax
import jax.numpy as jnp
from jax.experimental import pallas as pl
from jax.experimental.pallas import tpu as pltpu


def _graphmixer_te_kernel(ts_ref, w_ref, w1t_ref, b1_ref, w2t_ref, b2_ref, o_ref):
    # ts_ref: (TN, 1), w_ref: (1, D), w1t/w2t: (D, D), b1/b2: (1, D), o_ref: (TN, D)
    ts = ts_ref[...]                                    # (TN, 1) f32
    map_ts = ts * w_ref[...]                            # broadcast -> (TN, D), VPU
    harmonic = jnp.sin(map_ts)                          # (TN, D) f32 (binding VPU work)

    # MXU matmuls: inputs in the weight dtype (f32 or bf16), f32 accumulation.
    mm_dtype = w1t_ref.dtype
    h1 = jnp.dot(harmonic.astype(mm_dtype), w1t_ref[...],
                 preferred_element_type=jnp.float32) + b1_ref[...]
    h1 = jnp.maximum(h1, 0.0)                           # ReLU, f32 on VPU
    out = jnp.dot(h1.astype(mm_dtype), w2t_ref[...],
                  preferred_element_type=jnp.float32) + b2_ref[...]
    o_ref[...] = out.astype(o_ref.dtype)


def prepare_params(w, w1, b1, w2, b2, *, weight_dtype=jnp.float32):
    """One-time parameter preparation (hoists transpose / reshape / cast out of
    the per-call path). PyTorch Linear convention y = x @ W.T + b, so we store
    W.T with layout (in, out)."""
    D = w.shape[0]
    w_row = jnp.asarray(w, jnp.float32).reshape(1, D)
    w1t = jnp.asarray(w1, jnp.float32).T.astype(weight_dtype)    # (in, out)
    w2t = jnp.asarray(w2, jnp.float32).T.astype(weight_dtype)
    b1_row = jnp.asarray(b1, jnp.float32).reshape(1, D)
    b2_row = jnp.asarray(b2, jnp.float32).reshape(1, D)
    return w_row, w1t, b1_row, w2t, b2_row


def _choose_row_tile(n_rows, requested):
    """Pick a row tile: multiple of 8, <= requested, grid >= 2 when possible
    (v7x has 2 TensorCores), padding minimized."""
    n8 = ((n_rows + 7) // 8) * 8
    t = min(max(8, (int(requested) // 8) * 8), n8)
    grid_n = (n8 + t - 1) // t
    if n8 > 8 and grid_n < 2:
        grid_n = 2                       # give both v7x TensorCores work
    t = (((n8 + grid_n - 1) // grid_n + 7) // 8) * 8   # rebalance -> less padding
    return t


def graphmixer_te(ts, params, *, row_tile=512, out_dtype=jnp.float32,
                  single_buffer_weights=True):
    """Pallas forward of GraphMixerTE.

    ts     : [N, 1] (or [N]) float32 timestamps
    params : output of prepare_params()
    returns [N, D] in out_dtype
    """
    w_row, w1t, b1_row, w2t, b2_row = params
    D = w_row.shape[1]

    ts = jnp.asarray(ts, jnp.float32).reshape(-1, 1)
    N = ts.shape[0]

    tile = _choose_row_tile(N, row_tile)
    grid_n = (N + tile - 1) // tile
    n_pad = grid_n * tile
    if n_pad != N:
        ts = jnp.pad(ts, ((0, n_pad - N), (0, 0)))      # padded rows sliced off below

    # Weights / biases have constant index_maps -> keep a single resident VMEM
    # copy instead of the default double buffer.
    resident = (dict(pipeline_mode=pl.Buffered(buffer_count=1))
                if single_buffer_weights else {})

    out = pl.pallas_call(
        _graphmixer_te_kernel,
        out_shape=jax.ShapeDtypeStruct((n_pad, D), out_dtype),
        grid_spec=pltpu.PrefetchScalarGridSpec(
            num_scalar_prefetch=0,
            grid=(grid_n,),
            in_specs=[
                pl.BlockSpec((tile, 1), lambda i: (i, 0)),             # ts rows
                pl.BlockSpec((1, D), lambda i: (0, 0), **resident),    # freq vector
                pl.BlockSpec((D, D), lambda i: (0, 0), **resident),    # w1.T
                pl.BlockSpec((1, D), lambda i: (0, 0), **resident),    # b1
                pl.BlockSpec((D, D), lambda i: (0, 0), **resident),    # w2.T
                pl.BlockSpec((1, D), lambda i: (0, 0), **resident),    # b2
            ],
            out_specs=pl.BlockSpec((tile, D), lambda i: (i, 0)),
        ),
        compiler_params=pltpu.CompilerParams(
            dimension_semantics=("parallel",)),
    )(ts, w_row, w1t, b1_row, w2t, b2_row)
    return out[:N]


def make_params(time_dim, key):
    """Deterministic parameters matching GraphMixerTE.__init__ shapes."""
    # fixed (non-trainable) frequency vector, exactly as the PyTorch module builds it
    c = int(np.sqrt(time_dim))
    w_np = np.array([c ** (-(i - 1) / c) for i in range(1, time_dim + 1)],
                    dtype=np.float32)
    w = jnp.asarray(w_np)

    # Linear(time_dim, time_dim) x 2, PyTorch-style uniform init, deterministic keys
    k1, k2, k3, k4 = jax.random.split(key, 4)
    bound = 1.0 / np.sqrt(time_dim)
    w1 = jax.random.uniform(k1, (time_dim, time_dim), jnp.float32, -bound, bound)
    b1 = jax.random.uniform(k2, (time_dim,), jnp.float32, -bound, bound)
    w2 = jax.random.uniform(k3, (time_dim, time_dim), jnp.float32, -bound, bound)
    b2 = jax.random.uniform(k4, (time_dim,), jnp.float32, -bound, bound)
    return w, w1, b1, w2, b2


def reference_forward(ts, w, w1, b1, w2, b2):
    map_ts = ts * w.reshape(1, -1)
    harmonic = jnp.sin(map_ts)
    h = jnp.maximum(harmonic @ w1.T + b1, 0.0)
    return h @ w2.T + b2


if __name__ == "__main__":
    time_dim = 128            # lane-dense last dim
    N = 200                   # deliberately NOT a multiple of the row tile

    key = jax.random.PRNGKey(0)
    kp, kt = jax.random.split(key)
    w, w1, b1, w2, b2 = make_params(time_dim, kp)

    # timestamps: [N, 1] float32 (broadcast against w, as in the PyTorch forward)
    ts = jax.random.uniform(kt, (N, 1), jnp.float32, 0.0, 100.0)
    ref = reference_forward(ts, w, w1, b1, w2, b2)

    # --- f32-weight path: bit-for-bit semantics of the PyTorch module ----------
    params_f32 = prepare_params(w, w1, b1, w2, b2, weight_dtype=jnp.float32)
    fwd_f32 = jax.jit(functools.partial(graphmixer_te, row_tile=512,
                                        out_dtype=jnp.float32))
    out_f32 = jax.block_until_ready(fwd_f32(ts, params_f32))
    np.testing.assert_allclose(np.asarray(out_f32), np.asarray(ref),
                               rtol=1e-5, atol=1e-5)

    # --- bf16-weight path (v6e/v7x MXU-friendly); elementwise math stays f32 ---
    params_bf16 = prepare_params(w, w1, b1, w2, b2, weight_dtype=jnp.bfloat16)
    fwd_bf16 = jax.jit(functools.partial(graphmixer_te, row_tile=512,
                                         out_dtype=jnp.float32))
    out_bf16 = jax.block_until_ready(fwd_bf16(ts, params_bf16))
    np.testing.assert_allclose(np.asarray(out_bf16), np.asarray(ref),
                               rtol=5e-2, atol=5e-2)

    print("KERNEL_OK")
</pallas_src>

<mosaic_0001>
module attributes {stable_mosaic.version = 11 : i64} {
  func.func @_graphmixer_te_kernel(%arg0: i32, %arg1: memref<104x1xf32, #tpu.memory_space<vmem>>, %arg2: memref<1x128xf32, #tpu.memory_space<vmem>>, %arg3: memref<128x128xf32, #tpu.memory_space<vmem>>, %arg4: memref<1x128xf32, #tpu.memory_space<vmem>>, %arg5: memref<128x128xf32, #tpu.memory_space<vmem>>, %arg6: memref<1x128xf32, #tpu.memory_space<vmem>>, %arg7: memref<104x128xf32, #tpu.memory_space<vmem>>) attributes {dimension_semantics = [#tpu.dimension_semantics<parallel>], iteration_bounds = array<i64: 2>, scalar_prefetch = 0 : i64, scratch_operands = 0 : i64, tpu.core_type = #tpu.core_type<tc>, window_params = [{transform_indices = @transform_0, window_bounds = array<i64: 104, 1>}, {pipeline_mode = #tpu.pipeline_mode<synchronous>, transform_indices = @transform_1, window_bounds = array<i64: 1, 128>}, {pipeline_mode = #tpu.pipeline_mode<synchronous>, transform_indices = @transform_2, window_bounds = array<i64: 128, 128>}, {pipeline_mode = #tpu.pipeline_mode<synchronous>, transform_indices = @transform_3, window_bounds = array<i64: 1, 128>}, {pipeline_mode = #tpu.pipeline_mode<synchronous>, transform_indices = @transform_4, window_bounds = array<i64: 128, 128>}, {pipeline_mode = #tpu.pipeline_mode<synchronous>, transform_indices = @transform_5, window_bounds = array<i64: 1, 128>}, {transform_indices = @transform_6, window_bounds = array<i64: 104, 128>}]} {
    %c0 = arith.constant 0 : index
    %c0_0 = arith.constant 0 : index
    %0 = vector.load %arg1[%c0, %c0_0] : memref<104x1xf32, #tpu.memory_space<vmem>>, vector<104x1xf32>
    %c0_1 = arith.constant 0 : index
    %c0_2 = arith.constant 0 : index
    %1 = vector.load %arg2[%c0_1, %c0_2] : memref<1x128xf32, #tpu.memory_space<vmem>>, vector<1x128xf32>
    %2 = vector.broadcast %0 : vector<104x1xf32> to vector<104x128xf32>
    %3 = vector.broadcast %1 : vector<1x128xf32> to vector<104x128xf32>
    %4 = arith.mulf %2, %3 : vector<104x128xf32>
    %5 = math.sin %4 : vector<104x128xf32>
    %c0_3 = arith.constant 0 : index
    %c0_4 = arith.constant 0 : index
    %6 = vector.load %arg3[%c0_3, %c0_4] : memref<128x128xf32, #tpu.memory_space<vmem>>, vector<128x128xf32>
    %cst = arith.constant dense<0.000000e+00> : vector<104x128xf32>
    %7 = tpu.matmul %5, %6, %cst {dimension_numbers = #tpu.dot_dimension_numbers<[1], [0], [0], [1], [0, 0, 1, 1], [], []>} : vector<104x128xf32>, vector<128x128xf32>, vector<104x128xf32> -> vector<104x128xf32>
    %c0_5 = arith.constant 0 : index
    %c0_6 = arith.constant 0 : index
    %8 = vector.load %arg4[%c0_5, %c0_6] : memref<1x128xf32, #tpu.memory_space<vmem>>, vector<1x128xf32>
    %9 = vector.broadcast %8 : vector<1x128xf32> to vector<104x128xf32>
    %10 = arith.addf %7, %9 : vector<104x128xf32>
    %cst_7 = arith.constant 0.000000e+00 : f32
    %11 = vector.broadcast %cst_7 : f32 to vector<104x128xf32>
    %12 = arith.maximumf %10, %11 : vector<104x128xf32>
    %c0_8 = arith.constant 0 : index
    %c0_9 = arith.constant 0 : index
    %13 = vector.load %arg5[%c0_8, %c0_9] : memref<128x128xf32, #tpu.memory_space<vmem>>, vector<128x128xf32>
    %cst_10 = arith.constant dense<0.000000e+00> : vector<104x128xf32>
    %14 = tpu.matmul %12, %13, %cst_10 {dimension_numbers = #tpu.dot_dimension_numbers<[1], [0], [0], [1], [0, 0, 1, 1], [], []>} : vector<104x128xf32>, vector<128x128xf32>, vector<104x128xf32> -> vector<104x128xf32>
    %c0_11 = arith.constant 0 : index
    %c0_12 = arith.constant 0 : index
    %15 = vector.load %arg6[%c0_11, %c0_12] : memref<1x128xf32, #tpu.memory_space<vmem>>, vector<1x128xf32>
    %16 = vector.broadcast %15 : vector<1x128xf32> to vector<104x128xf32>
    %17 = arith.addf %14, %16 : vector<104x128xf32>
    %c0_13 = arith.constant 0 : index
    %c0_14 = arith.constant 0 : index
    %18 = vector.load %arg7[%c0_13, %c0_14] : memref<104x128xf32, #tpu.memory_space<vmem>>, vector<104x128xf32>
    tpu.vector_store %arg7[%c0_13, %c0_14], %17 {strides = array<i32>} : memref<104x128xf32, #tpu.memory_space<vmem>>, vector<104x128xf32>,
    return
  }
  func.func @transform_0(%arg0: i32) -> (i32, i32) {
    %c0_i32 = arith.constant 0 : i32
    %c0_i32_0 = arith.constant 0 : i32
    return %arg0, %c0_i32 : i32, i32
  }
  func.func @transform_1(%arg0: i32) -> (i32, i32) {
    %c0_i32 = arith.constant 0 : i32
    %c0_i32_0 = arith.constant 0 : i32
    %c0_i32_1 = arith.constant 0 : i32
    return %c0_i32, %c0_i32_0 : i32, i32
  }
  func.func @transform_2(%arg0: i32) -> (i32, i32) {
    %c0_i32 = arith.constant 0 : i32
    %c0_i32_0 = arith.constant 0 : i32
    %c0_i32_1 = arith.constant 0 : i32
    return %c0_i32, %c0_i32_0 : i32, i32
  }
  func.func @transform_3(%arg0: i32) -> (i32, i32) {
    %c0_i32 = arith.constant 0 : i32
    %c0_i32_0 = arith.constant 0 : i32
    %c0_i32_1 = arith.constant 0 : i32
    return %c0_i32, %c0_i32_0 : i32, i32
  }
  func.func @transform_4(%arg0: i32) -> (i32, i32) {
    %c0_i32 = arith.constant 0 : i32
    %c0_i32_0 = arith.constant 0 : i32
    %c0_i32_1 = arith.constant 0 : i32
    return %c0_i32, %c0_i32_0 : i32, i32
  }
  func.func @transform_5(%arg0: i32) -> (i32, i32) {
    %c0_i32 = arith.constant 0 : i32
    %c0_i32_0 = arith.constant 0 : i32
    %c0_i32_1 = arith.constant 0 : i32
    return %c0_i32, %c0_i32_0 : i32, i32
  }
  func.func @transform_6(%arg0: i32) -> (i32, i32) {
    %c0_i32 = arith.constant 0 : i32
    %c0_i32_0 = arith.constant 0 : i32
    return %arg0, %c0_i32 : i32, i32
  }
}

</mosaic_0001>

<bundles_post_ra>
// kernel: graphmixer_te.1
= control target key start
LH: loop header
LB: loop body
LE: loop exit
PB: predicated region body
PF: predicated region fallthrough
CT: control target
= control target key end

     0   :  { %s2533_s21 = smov 0   ;;  %s3960_s0 = inlined_call_operand.vmem [shape: f32[208,1], index: 0, kind: input, shape index: {}]   ;;  %s3961_s1 = inlined_call_operand.vmem [shape: f32[1,128], index: 1, kind: input, shape index: {}]   ;;  %s3962_s2 = inlined_call_operand.vmem [shape: f32[128,128], index: 2, kind: input, shape index: {}]   ;;  %s3963_s3 = inlined_call_operand.vmem [shape: f32[1,128], index: 3, kind: input, shape index: {}]   ;;  %s3964_s4 = inlined_call_operand.vmem [shape: f32[128,128], index: 4, kind: input, shape index: {}]   ;;  %s3965_s5 = inlined_call_operand.vmem [shape: f32[1,128], index: 5, kind: input, shape index: {}]   ;;  %s3966_s6 = inlined_call_operand.vmem [shape: f32[208,128], index: 6, kind: output, shape index: {}]  }
   0x1 LB: > { %s2093_s22 = sadd.s32 4294967295, %s2487_s21   ;;  %p2097_p0 = scmp.ge.s32.totalorder %s2487_s21, 1  ;;  %s2487_s21 = sphi %s2533_s21, %s16_s21  }
   0x2   : > { %p213_p1 = scmp.lt.s32.totalorder %s2487_s21, 3 }
   0x4   : > { %p214_p2 = pnand %p2097_p0, %p213_p1 }
   0x6   : > { %217 = sbr.rel (%p214_p2) target bundleno = 878 (0x36e), region = 44 }
   0xb   : > { %s243_s23 = smul.u32 13, %s2093_s22  ;;  %v2489_v0 = vmov 0   ;;  %v2552_v14 = vld [vmem:[%s3961_s1] ss:$0 sm:$0xff]  ;;  %v3983_v53 = vmov 683565275  }
   0xc   : > { %2427 = vset.pattern.permute.xlu1 %v2489_v0  ;;  %2426 = vset.pattern.permute.xlu0 %v2489_v0  ;;  %v3979_v55 = vmov 2475754826   ;;  %v3977_v57 = vmov 2131351028   ;;  %v3981_v59 = vmov 2102212464  }
   0xd   : > { %p244_p3 = scmp.lt.s32.totalorder %s243_s23, 25  ;;  %v3999_v61 = vmov 920167782  }
   0xf   : > { %s4083_s23 = smov (!%p244_p3, %s243_s23), 25 }
  0x10   : > { %s2098_s24 = sshll.u32 %s4083_s23, 3 }
  0x11   : > { %s247_s27 = scalar_lea.vmem %s3960_s0, %s2098_s24  ;;  %s3942_s15 = scalar_lea.vmem %s3966_s6, %s2098_s24 }
  0x12   : > { %v257_v1 = vld [vmem:[%s247_s27 + $0x10] sm:$0xff]  ;;  %v255_v2 = vld [vmem:[%s247_s27] sm:$0xff]  ;;  %v258_v3 = vld [vmem:[%s247_s27 + $0x18] sm:$0xff] }
  0x13   : > { %281 = vperm.xlu1 %2427, %v257_v1   ;;  %271 = vperm.xlu0 %2426, %v255_v2   ;;  %v256_v4 = vld [vmem:[%s247_s27 + $0x8] sm:$0xff]  ;;  %v259_v6 = vld [vmem:[%s247_s27 + $0x20] sm:$0xff]  ;;  %v262_v7 = vld [vmem:[%s247_s27 + $0x38] sm:$0xff] }
  0x14   : > { %v260_v5 = vld [vmem:[%s247_s27 + $0x28] sm:$0xff]  ;;  %v261_v8 = vld [vmem:[%s247_s27 + $0x30] sm:$0xff]  ;;  %v263_v10 = vld [vmem:[%s247_s27 + $0x40] sm:$0xff] }
  0x15   : > { %v264_v9 = vld [vmem:[%s247_s27 + $0x48] sm:$0xff]  ;;  %v266_v11 = vld [vmem:[%s247_s27 + $0x58] sm:$0xff]  ;;  %v265_v12 = vld [vmem:[%s247_s27 + $0x50] sm:$0xff] }
  0x16   : > { %v267_v13 = vld [vmem:[%s247_s27 + $0x60] sm:$0xff] }
  0x17   : > { %286 = vperm.xlu1 %2427, %v258_v3   ;;  %276 = vperm.xlu0 %2426, %v256_v4  }
  0x1b   : > { %296 = vperm.xlu1 %2427, %v260_v5   ;;  %291 = vperm.xlu0 %2426, %v259_v6   ;;  %v3985_v5 = vmov 1326507024  }
  0x1f   : > { %306 = vperm.xlu1 %2427, %v262_v7   ;;  %301 = vperm.xlu0 %2426, %v261_v8  }
  0x23   : > { %316 = vperm.xlu1 %2427, %v264_v9   ;;  %311 = vperm.xlu0 %2426, %v263_v10  }
  0x27   : > { %326 = vperm.xlu1 %2427, %v266_v11   ;;  %321 = vperm.xlu0 %2426, %v265_v12  }
  0x2b   : > { %331 = vperm.xlu0 %2426, %v267_v13  }
  0x8e   : > { %v282_v15 = vpop.permute.xlu1 %281  ;;  %v272_v16 = vpop.permute.xlu0 %271 }
  0x8f   : > { %v2555_v17 = vmul.f32 %v2552_v14, %v282_v15  ;;  %v2558_v18 = vmul.f32 %v2552_v14, %v272_v16 }
  0x91   : > { %v3972_v19 = vand.u32 2147483647, %v2555_v17  ;;  %v564_v20 = vand.u32 2139095040, %v2555_v17  ;;  %v3976_v21 = vand.u32 2147483647, %v2558_v18  ;;  %v356_v22 = vand.u32 2139095040, %v2558_v18 }
  0x92   : > { %v287_v23 = vpop.permute.xlu1 %286  ;;  %v277_v24 = vpop.permute.xlu0 %276 }
  0x93   : > { %v565_v25 = vshrl.u32 %v564_v20, 23  ;;  %v568_v26 = vand.u32 8388607, %v3972_v19  ;;  %v360_v27 = vand.u32 8388607, %v3976_v21  ;;  %v2569_v28 = vmul.f32 %v2552_v14, %v287_v23 }
  0x94   : > { %v357_v29 = vshrl.u32 %v356_v22, 23  ;;  %v2572_v30 = vmul.f32 %v2552_v14, %v277_v24 }
  0x95   : > { %v2109_v31 = vadd.s32 4294967169, %v565_v25  ;;  %v3970_v32 = vand.u32 2147483647, %v2569_v28  ;;  %v569_v33 = vor.u32 8388608, %v568_v26  ;;  %v668_v35 = vand.u32 2139095040, %v2569_v28 }
  0x96   : > { %v2101_v34 = vadd.s32 4294967169, %v357_v29  ;;  %v361_v37 = vor.u32 8388608, %v360_v27  ;;  %v460_v41 = vand.u32 2139095040, %v2572_v30 }
  0x97   : > { %v571_v36 = vadd.s32 1, %v2109_v31  ;;  %v669_v39 = vshrl.u32 %v668_v35, 23  ;;  %v2578_v40 = vand.u32 8388607, %v3970_v32  ;;  %v2581_v43 = vshll.u32 %v569_v33, 8 }
  0x98   : > { %v363_v38 = vadd.s32 1, %v2101_v34  ;;  %v2583_v47 = vshll.u32 %v361_v37, 8  ;;  %v2588_v51 = vshrl.u32 %v460_v41, 23 }
  0x99   : > { %vm572_vm0 = vcmp.gt.s32.totalorder %v571_v36, 0  ;;  %v2113_v49 = vadd.s32 4294967169, %v669_v39  ;;  %v673_v50 = vor.u32 8388608, %v2578_v40 }
  0x9a   : > { %v573_v42 = vsel %vm572_vm0, %v571_v36, 0  ;;  %vm364_vm1 = vcmp.gt.s32.totalorder %v363_v38, 0 }
  0x9b   : > { %v574_v44 = vshrl.u32 %v573_v42, 5  ;;  %v575_v45 = vand.u32 31, %v573_v42  ;;  %v365_v46 = vsel %vm364_vm1, %v363_v38, 0  ;;  %v675_v13 = vadd.s32 1, %v2113_v49 }
  0x9c   : > { %v2585_v48 = vand.u32 31, %v365_v46  ;;  %v2595_v63 = vshrl.u32 %v365_v46, 5 }
  0x9d   : > { %v576_v52 = vsub.s32 32, %v575_v45  ;;  %v578_v54 = vshll.u32 %v3983_v53, %v575_v45  ;;  %v581_v56 = vshll.u32 %v3979_v55, %v575_v45  ;;  %v584_v58 = vshll.u32 %v3977_v57, %v575_v45 }
  0x9e   : > { %v587_v60 = vshll.u32 %v3981_v59, %v575_v45  ;;  %v590_v62 = vshll.u32 %v3999_v61, %v575_v45  ;;  %vm593_vm2 = vcmp.lt.s32.totalorder %v574_v44, 1  ;;  %vm595_vm3 = vcmp.lt.s32.totalorder %v574_v44, 3 }
  0x9f   : > { %v577_v0 = vshrl.u32 %v3983_v53, %v576_v52  ;;  %v579_v1 = vshrl.u32 %v3979_v55, %v576_v52  ;;  %v582_v2 = vshrl.u32 %v3977_v57, %v576_v52  ;;  %v585_v3 = vshrl.u32 %v3981_v59, %v576_v52 }
  0xa0   : > { %v588_v4 = vshrl.u32 %v3999_v61, %v576_v52  ;;  %v591_v6 = vshrl.u32 %v3985_v5, %v576_v52  ;;  %vm596_vm4 = vcmp.lt.s32.totalorder %v574_v44, 4  ;;  %v368_v10 = vsub.s32 32, %v2585_v48 }
  0xa1   : > { %v580_v7 = vor.u32 %v579_v1, %v578_v54  ;;  %v583_v8 = vor.u32 %v582_v2, %v581_v56  ;;  %v586_v9 = vor.u32 %v585_v3, %v584_v58  ;;  %vm594_vm5 = vcmp.lt.s32.totalorder %v574_v44, 2 }
  0xa2   : > { %v589_v11 = vor.u32 %v588_v4, %v587_v60  ;;  %v592_v12 = vor.u32 %v591_v6, %v590_v62  ;;  %v370_v26 = vshll.u32 %v3983_v53, %v2585_v48  ;;  %v371_v31 = vshrl.u32 %v3979_v55, %v368_v10 }
  0xa3   : > { %v597_v15 = vsel %vm593_vm2, %v577_v0, %v580_v7  ;;  %v598_v16 = vsel %vm596_vm4, %v586_v9, 2102212464  ;;  %v601_v20 = vsel %vm593_vm2, %v580_v7, %v583_v8  ;;  %v605_v22 = vsel %vm593_vm2, %v583_v8, %v586_v9 }
  0xa4   : > { %v599_v23 = vsel %vm595_vm3, %v583_v8, %v598_v16  ;;  %v602_v24 = vsel %vm596_vm4, %v589_v11, 920167782  ;;  %v606_v25 = vsel %vm596_vm4, %v592_v12, 1326507024  ;;  %v373_v33 = vshll.u32 %v3979_v55, %v2585_v48 }
  0xa5   : > { %v603_v27 = vsel %vm595_vm3, %v586_v9, %v602_v24  ;;  %v607_v29 = vsel %vm595_vm3, %v589_v11, %v606_v25  ;;  %v600_v34 = vsel %vm594_vm5, %v597_v15, %v599_v23  ;;  %v374_v37 = vshrl.u32 %v3977_v57, %v368_v10 }
  0xa6   : > { %v604_v35 = vsel %vm594_vm5, %v601_v20, %v603_v27  ;;  %v608_v36 = vsel %vm594_vm5, %v605_v22, %v607_v29  ;;  %v372_v45 = vor.u32 %v371_v31, %v370_v26  ;;  %v376_v49 = vshll.u32 %v3977_v57, %v2585_v48 }
  0xa7   : > { %v2620_v38 = vmul.u32.u64.low %v2581_v43, %v608_v36  ;;  %v2621_v39 = vmul.u32.u64.high %v2581_v43, %v608_v36, %v2620_v38  ;;  %v2624_v41 = vmul.u32.u64.low %v2581_v43, %v604_v35  ;;  %v2625_v42 = vmul.u32.u64.high %v2581_v43, %v604_v35, %v2624_v41 }
  0xa8   : > { %v375_v46 = vor.u32 %v374_v37, %v373_v33  ;;  %v377_v52 = vshrl.u32 %v3981_v59, %v368_v10  ;;  %v369_v44 = vshrl.u32 %v3983_v53, %v368_v10  ;;  %v379_v54 = vshll.u32 %v3981_v59, %v2585_v48 }
  0xa9   : > { %v380_v56 = vshrl.u32 %v3999_v61, %v368_v10  ;;  %v383_v58 = vshrl.u32 %v3985_v5, %v368_v10  ;;  %v616_v60 = vmul.u32 %v2581_v43, %v600_v34  ;;  %v382_v0 = vshll.u32 %v3999_v61, %v2585_v48 }
  0xaa   : > { %v378_v62 = vor.u32 %v377_v52, %v376_v49  ;;  %vm385_vm6 = vcmp.lt.s32.totalorder %v2595_v63, 1  ;;  %vm618_vm7 = vc.u32 %v2621_v39, %v2624_v41  ;;  %v619_v1 = vadd.s32 1, %v2625_v42 }
  0xab   : > { %v381_v2 = vor.u32 %v380_v56, %v379_v54  ;;  %vm386_vm8 = vcmp.lt.s32.totalorder %v2595_v63, 2  ;;  %v384_v3 = vor.u32 %v383_v58, %v382_v0  ;;  %vm387_vm9 = vcmp.lt.s32.totalorder %v2595_v63, 3 }
  0xac   : > { %vm388_vm10 = vcmp.lt.s32.totalorder %v2595_v63, 4  ;;  %v393_v43 = vsel %vm385_vm6, %v372_v45, %v375_v46  ;;  %v620_v4 = vsel %vm618_vm7, %v619_v1, %v2625_v42  ;;  %v397_v7 = vsel %vm385_vm6, %v375_v46, %v378_v62 }
  0xad   : > { %v390_v6 = vsel %vm388_vm10, %v378_v62, 2102212464  ;;  %v394_v48 = vsel %vm388_vm10, %v381_v2, 920167782  ;;  %v621_v8 = vadd.s32 %v620_v4, %v616_v60  ;;  %v389_v9 = vsel %vm385_vm6, %v369_v44, %v372_v45 }
  0xae   : > { %v395_v10 = vsel %vm387_vm9, %v378_v62, %v394_v48  ;;  %v398_v11 = vsel %vm388_vm10, %v384_v3, 1326507024  ;;  %v391_v12 = vsel %vm387_vm9, %v375_v46, %v390_v6  ;;  %vm676_vm11 = vcmp.gt.s32.totalorder %v675_v13, 0 }
  0xaf   : > { %v396_v15 = vsel %vm386_vm8, %v393_v43, %v395_v10  ;;  %v399_v16 = vsel %vm387_vm9, %v381_v2, %v398_v11  ;;  %v622_v20 = vadd.s32 536870912, %v621_v8  ;;  %v677_v27 = vsel %vm676_vm11, %v675_v13, 0 }
  0xb0   : > { %v400_v22 = vsel %vm386_vm8, %v397_v7, %v399_v16  ;;  %v2652_v23 = vmul.u32.u64.low %v2583_v47, %v396_v15  ;;  %v2653_v24 = vmul.u32.u64.high %v2583_v47, %v396_v15, %v2652_v23  ;;  %v392_v31 = vsel %vm386_vm8, %v389_v9, %v391_v12 }
  0xb1   : > { %v2657_v25 = vmul.u32.u64.low %v2583_v47, %v400_v22  ;;  %v2658_v26 = vmul.u32.u64.high %v2583_v47, %v400_v22, %v2657_v25  ;;  %v2660_v29 = vshrl.u32 %v622_v20, 30  ;;  %v679_v33 = vand.u32 31, %v677_v27 }
  0xb2   : > { %v2666_v34 = vshll.u32 %v673_v50, 8  ;;  %v3975_v35 = vand.u32 2147483647, %v2572_v30  ;;  %v2105_v36 = vadd.s32 4294967169, %v2588_v51  ;;  %v411_v38 = vadd.s32 1, %v2653_v24 }
  0xb3   : > { %v624_v37 = vshll.u32 %v2660_v29, 30  ;;  %v680_v42 = vsub.s32 32, %v679_v33  ;;  %v682_v13 = vshll.u32 %v3983_v53, %v679_v33  ;;  %v408_v45 = vmul.u32 %v2583_v47, %v392_v31 }
  0xb4   : > { %vm410_vm12 = vc.u32 %v2658_v26, %v2652_v23  ;;  %v685_v40 = vshll.u32 %v3979_v55, %v679_v33  ;;  %v688_v50 = vshll.u32 %v3977_v57, %v679_v33  ;;  %v678_v46 = vshrl.u32 %v677_v27, 5 }
  0xb5   : > { %v2678_v63 = vsub.s32 %v621_v8, %v624_v37  ;;  %v412_v51 = vsel %vm410_vm12, %v411_v38, %v2653_v24  ;;  %v683_v49 = vshrl.u32 %v3979_v55, %v680_v42  ;;  %v686_v44 = vshrl.u32 %v3977_v57, %v680_v42 }
  0xb6   : > { %v413_v52 = vadd.s32 %v412_v51, %v408_v45  ;;  %v689_v54 = vshrl.u32 %v3981_v59, %v680_v42  ;;  %v691_v47 = vshll.u32 %v3981_v59, %v679_v33  ;;  %v692_v60 = vshrl.u32 %v3999_v61, %v680_v42  ;;  %v297_v51 = vpop.permute.xlu1 %296 }
  0xb7   : > { %v627_v56 = vsub.s32 0, %v2678_v63  ;;  %v684_v58 = vor.u32 %v683_v49, %v682_v13  ;;  %v694_v62 = vshll.u32 %v3999_v61, %v679_v33  ;;  %v687_v1 = vor.u32 %v686_v44, %v685_v40 }
  0xb8   : > { %v414_v0 = vadd.s32 536870912, %v413_v52  ;;  %v690_v2 = vor.u32 %v689_v54, %v688_v50  ;;  %v695_v3 = vshrl.u32 %v3985_v5, %v680_v42  ;;  %v681_v4 = vshrl.u32 %v3983_v53, %v680_v42 }
  0xb9   : > { %v2110_v43 = vmin.u32 %v627_v56, %v2678_v63  ;;  %v693_v6 = vor.u32 %v692_v60, %v691_v47  ;;  %v467_v48 = vadd.s32 1, %v2105_v36  ;;  %vm697_vm13 = vcmp.lt.s32.totalorder %v678_v46, 1 }
  0xba   : > { %v2691_v7 = vshrl.u32 %v414_v0, 30  ;;  %v696_v8 = vor.u32 %v695_v3, %v694_v62  ;;  %vm700_vm14 = vcmp.lt.s32.totalorder %v678_v46, 4  ;;  %vm698_vm15 = vcmp.lt.s32.totalorder %v678_v46, 2 }
  0xbb   : > { %v629_v9 = vclz %v2110_v43  ;;  %v702_v10 = vsel %vm700_vm14, %v690_v2, 2102212464  ;;  %v705_v11 = vsel %vm697_vm13, %v684_v58, %v687_v1  ;;  %vm699_vm0 = vcmp.lt.s32.totalorder %v678_v46, 3 }
  0xbc   : > { %v416_v12 = vshll.u32 %v2691_v7, 30  ;;  %v706_v15 = vsel %vm700_vm14, %v693_v6, 920167782  ;;  %v709_v16 = vsel %vm697_vm13, %v687_v1, %v690_v2  ;;  %v701_v22 = vsel %vm697_vm13, %v681_v4, %v684_v58 }
  0xbd   : > { %v2111_v20 = vadd.s32 4294967294, %v629_v9  ;;  %v707_v24 = vsel %vm699_vm0, %v690_v2, %v706_v15  ;;  %v710_v25 = vsel %vm700_vm14, %v696_v8, 1326507024  ;;  %v703_v31 = vsel %vm699_vm0, %v687_v1, %v702_v10 }
  0xbe   : > { %v2694_v27 = vsub.s32 %v413_v52, %v416_v12  ;;  %v708_v33 = vsel %vm698_vm15, %v705_v11, %v707_v24  ;;  %v711_v36 = vsel %vm699_vm0, %v693_v6, %v710_v25  ;;  %v704_v49 = vsel %vm698_vm15, %v701_v22, %v703_v31 }
  0xbf   : > { %vm2112_vm1 = vcmp.lt.s32.totalorder %v2111_v20, 0  ;;  %v712_v37 = vsel %vm698_vm15, %v709_v16, %v711_v36  ;;  %v2699_v38 = vmul.u32.u64.low %v2666_v34, %v708_v33  ;;  %v2700_v42 = vmul.u32.u64.high %v2666_v34, %v708_v33, %v2699_v38 }
  0xc0   : > { %v632_v13 = vsel %vm2112_vm1, 0, %v2111_v20  ;;  %v419_v45 = vsub.s32 0, %v2694_v27  ;;  %v2705_v40 = vmul.u32.u64.low %v2666_v34, %v712_v37  ;;  %v2706_v50 = vmul.u32.u64.high %v2666_v34, %v712_v37, %v2705_v40 }
  0xc1   : > { %vm468_vm2 = vcmp.gt.s32.totalorder %v467_v48, 0  ;;  %v637_v54 = vsub.s32 4294967266, %v632_v13  ;;  %v723_v47 = vadd.s32 1, %v2700_v42  ;;  %v464_v56 = vand.u32 8388607, %v3975_v35 }
  0xc2   : > { %v2102_v52 = vmin.u32 %v419_v45, %v2694_v27  ;;  %v469_v44 = vsel %vm468_vm2, %v467_v48, 0  ;;  %v2714_v58 = vmul.f32 %v2552_v14, %v297_v51  ;;  %v720_v62 = vmul.u32 %v2666_v34, %v704_v49 }
  0xc3   : > { %vm722_vm3 = vc.u32 %v2706_v50, %v2699_v38  ;;  %v471_v46 = vand.u32 31, %v469_v44  ;;  %v633_v0 = vsub.s32 32, %v632_v13  ;;  %v617_v2 = vadd.s32 %v2624_v41, %v2621_v39 }
  0xc4   : > { %v421_v60 = vclz %v2102_v52  ;;  %v724_v1 = vsel %vm722_vm3, %v723_v47, %v2700_v42  ;;  %v638_v6 = vadd.s32 127, %v637_v54  ;;  %v465_v48 = vor.u32 8388608, %v464_v56 }
  0xc5   : > { %v725_v43 = vadd.s32 %v724_v1, %v720_v62  ;;  %v472_v4 = vsub.s32 32, %v471_v46  ;;  %v3968_v8 = vand.u32 2147483647, %v2714_v58  ;;  %v876_v9 = vand.u32 2139095040, %v2714_v58 }
  0xc6   : > { %v2103_v3 = vadd.s32 4294967294, %v421_v60  ;;  %v409_v34 = vadd.s32 %v2652_v23, %v2658_v26  ;;  %v634_v12 = vshll.u32 %v2678_v63, %v632_v13  ;;  %v635_v15 = vshrl.u32 %v617_v2, %v633_v0 }
  0xc7   : > { %v726_v10 = vadd.s32 536870912, %v725_v43  ;;  %v475_v11 = vshrl.u32 %v3979_v55, %v472_v4  ;;  %v478_v39 = vshrl.u32 %v3977_v57, %v472_v4  ;;  %v481_v41 = vshrl.u32 %v3981_v59, %v472_v4 }
  0xc8   : > { %vm2104_vm4 = vcmp.lt.s32.totalorder %v2103_v3, 0  ;;  %v474_v20 = vshll.u32 %v3983_v53, %v471_v46  ;;  %v477_v22 = vshll.u32 %v3979_v55, %v471_v46  ;;  %v480_v24 = vshll.u32 %v3977_v57, %v471_v46 }
  0xc9   : > { %v2730_v16 = vshrl.u32 %v726_v10, 30  ;;  %v639_v23 = vshll.u32 %v638_v6, 23  ;;  %v424_v26 = vsel %vm2104_vm4, 0, %v2103_v3  ;;  %v470_v25 = vshrl.u32 %v469_v44, 5 }
  0xca   : > { %v2735_v31 = vshll.u32 %v465_v48, 8  ;;  %v476_v33 = vor.u32 %v475_v11, %v474_v20  ;;  %v479_v36 = vor.u32 %v478_v39, %v477_v22  ;;  %v482_v37 = vor.u32 %v481_v41, %v480_v24 }
  0xcb   : > { %v728_v63 = vshll.u32 %v2730_v16, 30  ;;  %v483_v42 = vshll.u32 %v3981_v59, %v471_v46  ;;  %v484_v13 = vshrl.u32 %v3999_v61, %v472_v4  ;;  %v486_v45 = vshll.u32 %v3999_v61, %v471_v46 }
  0xcc   : > { %v487_v40 = vshrl.u32 %v3985_v5, %v472_v4  ;;  %v636_v51 = vor.u32 %v635_v15, %v634_v12  ;;  %v429_v49 = vsub.s32 4294967266, %v424_v26  ;;  %v877_v44 = vshrl.u32 %v876_v9, 23 }
  0xcd   : > { %v2742_v52 = vsub.s32 %v725_v43, %v728_v63  ;;  %v425_v54 = vsub.s32 32, %v424_v26  ;;  %v485_v47 = vor.u32 %v484_v13, %v483_v42  ;;  %vm489_vm5 = vcmp.lt.s32.totalorder %v470_v25, 1 }
  0xce   : > { %v488_v56 = vor.u32 %v487_v40, %v486_v45  ;;  %v640_v60 = vor.u32 4788187, %v639_v23  ;;  %v473_v0 = vshrl.u32 %v3983_v53, %v472_v4  ;;  %vm492_vm6 = vcmp.lt.s32.totalorder %v470_v25, 4  ;;  %v292_v40 = vpop.permute.xlu0 %291 }
  0xcf   : > { %v731_v62 = vsub.s32 0, %v2742_v52  ;;  %vm491_vm7 = vcmp.lt.s32.totalorder %v470_v25, 3  ;;  %v494_v1 = vsel %vm492_vm6, %v482_v37, 2102212464  ;;  %v497_v46 = vsel %vm489_vm5, %v476_v33, %v479_v36 }
  0xd0   : > { %v498_v2 = vsel %vm492_vm6, %v485_v47, 920167782  ;;  %v430_v3 = vadd.s32 127, %v429_v49  ;;  %vm490_vm8 = vcmp.lt.s32.totalorder %v470_v25, 2  ;;  %v427_v48 = vshrl.u32 %v409_v34, %v425_v54 }
  0xd1   : > { %v2114_v43 = vmin.u32 %v731_v62, %v2742_v52  ;;  %v499_v6 = vsel %vm491_vm7, %v482_v37, %v498_v2  ;;  %v501_v10 = vsel %vm489_vm5, %v479_v36, %v482_v37  ;;  %v502_v11 = vsel %vm492_vm6, %v488_v56, 1326507024 }
  0xd2   : > { %v500_v9 = vsel %vm490_vm8, %v497_v46, %v499_v6  ;;  %v493_v4 = vsel %vm489_vm5, %v473_v0, %v476_v33  ;;  %v495_v15 = vsel %vm491_vm7, %v479_v36, %v494_v1  ;;  %v503_v39 = vsel %vm491_vm7, %v485_v47, %v502_v11  ;;  %v307_v0 = vpop.permute.xlu1 %306 }
  0xd3   : > { %v733_v12 = vclz %v2114_v43  ;;  %v504_v41 = vsel %vm490_vm8, %v501_v10, %v503_v39  ;;  %v2753_v20 = vmul.u32.u64.low %v2735_v31, %v500_v9  ;;  %v2754_v22 = vmul.u32.u64.high %v2735_v31, %v500_v9, %v2753_v20 }
  0xd4   : > { %v2121_v24 = vadd.s32 4294967169, %v877_v44  ;;  %v431_v23 = vshll.u32 %v430_v3, 23  ;;  %v2758_v63 = vmul.u32.u64.low %v2735_v31, %v504_v41  ;;  %v2759_v42 = vmul.u32.u64.high %v2735_v31, %v504_v41, %v2758_v63 }
  0xd5   : > { %v2115_v34 = vadd.s32 4294967294, %v733_v12  ;;  %v426_v37 = vshll.u32 %v2694_v27, %v424_v26  ;;  %v496_v33 = vsel %vm490_vm8, %v493_v4, %v495_v15  ;;  %v880_v36 = vand.u32 8388607, %v3968_v8 }
  0xd6   : > { %v883_v13 = vadd.s32 1, %v2121_v24  ;;  %v641_v45 = vand.u32 2147483647, %v640_v60  ;;  %v515_v54 = vadd.s32 1, %v2754_v22  ;;  %v643_v47 = vcvt.s32.f32 %v636_v51 }
  0xd7   : > { %vm2116_vm9 = vcmp.lt.s32.totalorder %v2115_v34, 0  ;;  %v2765_v49 = vor.u32 %v427_v48, %v426_v37  ;;  %v432_v56 = vor.u32 4788187, %v431_v23  ;;  %v512_v27 = vmul.u32 %v2735_v31, %v496_v33 }
  0xd8   : > { %v2767_v44 = vsel %vm2116_vm9, 0, %v2115_v34  ;;  %vm884_vm10 = vcmp.gt.s32.totalorder %v883_v13, 0  ;;  %v881_v26 = vor.u32 8388608, %v880_v36  ;;  %vm514_vm11 = vc.u32 %v2759_v42, %v2753_v20 }
  0xd9   : > { %v741_v25 = vsub.s32 4294967266, %v2767_v44  ;;  %v885_v60 = vsel %vm884_vm10, %v883_v13, 0  ;;  %v2775_v62 = vmul.f32 %v2552_v14, %v292_v40  ;;  %v721_v1 = vadd.s32 %v2699_v38, %v2706_v50 }
  0xda   : > { %v516_v46 = vsel %vm514_vm11, %v515_v54, %v2754_v22  ;;  %v2780_v51 = vmul.f32 %v643_v47, %v641_v45  ;;  %v435_v31 = vcvt.s32.f32 %v2765_v49  ;;  %v887_v3 = vand.u32 31, %v885_v60 }
  0xdb   : > { %v517_v2 = vadd.s32 %v516_v46, %v512_v27  ;;  %v433_v43 = vand.u32 2147483647, %v432_v56  ;;  %v737_v6 = vsub.s32 32, %v2767_v44  ;;  %v2784_v48 = vshll.u32 %v881_v26, 8 }
  0xdc   : > { %v2787_v9 = vmul.f32 %v2552_v14, %v307_v0  ;;  %v742_v10 = vadd.s32 127, %v741_v25  ;;  %v888_v12 = vsub.s32 32, %v887_v3  ;;  %v3969_v38 = vand.u32 2147483647, %v2775_v62 }
  0xdd   : > { %v518_v11 = vadd.s32 536870912, %v517_v2  ;;  %v886_v50 = vshrl.u32 %v885_v60, 5  ;;  %v890_v4 = vshll.u32 %v3983_v53, %v887_v3  ;;  %v893_v15 = vshll.u32 %v3979_v55, %v887_v3 }
  0xde   : > { %v772_v39 = vand.u32 2139095040, %v2775_v62  ;;  %v891_v22 = vshrl.u32 %v3979_v55, %v888_v12  ;;  %v894_v24 = vshrl.u32 %v3977_v57, %v888_v12  ;;  %v896_v23 = vshll.u32 %v3977_v57, %v887_v3 }
  0xdf   : > { %v2793_v41 = vshrl.u32 %v518_v11, 30  ;;  %v897_v34 = vshrl.u32 %v3981_v59, %v888_v12  ;;  %v899_v63 = vshll.u32 %v3981_v59, %v887_v3  ;;  %v900_v37 = vshrl.u32 %v3999_v61, %v888_v12 }
  0xe0   : > { %v902_v33 = vshll.u32 %v3999_v61, %v887_v3  ;;  %v892_v13 = vor.u32 %v891_v22, %v890_v4  ;;  %v895_v45 = vor.u32 %v894_v24, %v893_v15  ;;  %v903_v40 = vshrl.u32 %v3985_v5, %v888_v12 }
  0xe1   : > { %v520_v36 = vshll.u32 %v2793_v41, 30  ;;  %v743_v49 = vshll.u32 %v742_v10, 23  ;;  %v898_v54 = vor.u32 %v897_v34, %v896_v23  ;;  %v901_v47 = vor.u32 %v900_v37, %v899_v63 }
  0xe2   : > { %vm905_vm12 = vcmp.lt.s32.totalorder %v886_v50, 1  ;;  %v889_v27 = vshrl.u32 %v3983_v53, %v888_v12  ;;  %v904_v26 = vor.u32 %v903_v40, %v902_v33  ;;  %vm908_vm13 = vcmp.lt.s32.totalorder %v886_v50, 4 }
  0xe3   : > { %v2804_v56 = vsub.s32 %v517_v2, %v520_v36  ;;  %vm907_vm14 = vcmp.lt.s32.totalorder %v886_v50, 3  ;;  %v910_v25 = vsel %vm908_vm13, %v898_v54, 2102212464  ;;  %v913_v60 = vsel %vm905_vm12, %v892_v13, %v895_v45 }
  0xe4   : > { %v914_v0 = vsel %vm908_vm13, %v901_v47, 920167782  ;;  %vm906_vm15 = vcmp.lt.s32.totalorder %v886_v50, 2  ;;  %v917_v11 = vsel %vm905_vm12, %v895_v45, %v898_v54  ;;  %v909_v4 = vsel %vm905_vm12, %v889_v27, %v892_v13 }
  0xe5   : > { %v523_v46 = vsub.s32 0, %v2804_v56  ;;  %v915_v3 = vsel %vm907_vm14, %v898_v54, %v914_v0  ;;  %v911_v10 = vsel %vm907_vm14, %v895_v45, %v910_v25  ;;  %v918_v22 = vsel %vm908_vm13, %v904_v26, 1326507024 }
  0xe6   : > { %v916_v15 = vsel %vm906_vm15, %v913_v60, %v915_v3  ;;  %v919_v24 = vsel %vm907_vm14, %v901_v47, %v918_v22  ;;  %v436_v34 = vmul.f32 %v435_v31, %v433_v43  ;;  %v738_v63 = vshll.u32 %v2742_v52, %v2767_v44 }
  0xe7   : > { %v2106_v2 = vmin.u32 %v523_v46, %v2804_v56  ;;  %v2811_v12 = vmul.u32.u64.low %v2784_v48, %v916_v15  ;;  %v2812_v23 = vmul.u32.u64.high %v2784_v48, %v916_v15, %v2811_v12  ;;  %v920_v37 = vsel %vm906_vm15, %v917_v11, %v919_v24 }
  0xe8   : > { %v773_v33 = vshrl.u32 %v772_v39, 23  ;;  %v739_v36 = vshrl.u32 %v721_v1, %v737_v6  ;;  %v2819_v45 = vmul.u32.u64.low %v2784_v48, %v920_v37  ;;  %v2820_v40 = vmul.u32.u64.high %v2784_v48, %v920_v37, %v2819_v45 }
  0xe9   : > { %v525_v13 = vclz %v2106_v2  ;;  %v744_v54 = vor.u32 4788187, %v743_v49  ;;  %v912_v47 = vsel %vm906_vm15, %v909_v4, %v911_v10  ;;  %v1084_v26 = vand.u32 2139095040, %v2787_v9  ;;  %v302_v10 = vpop.permute.xlu0 %301 }
  0xea   : > { %v2117_v27 = vadd.s32 4294967169, %v773_v33  ;;  %v931_v31 = vadd.s32 1, %v2812_v23  ;;  %v776_v52 = vand.u32 8388607, %v3969_v38  ;;  %v3967_v44 = vand.u32 2147483647, %v2787_v9 }
  0xeb   : > { %v2107_v25 = vadd.s32 4294967294, %v525_v13  ;;  %v645_v1 = vxor.u32 2147483648, %v2780_v51  ;;  %v1085_v6 = vshrl.u32 %v1084_v26, 23  ;;  %v740_v39 = vor.u32 %v739_v36, %v738_v63 }
  0xec   : > { %v779_v43 = vadd.s32 1, %v2117_v27  ;;  %v928_v50 = vmul.u32 %v2784_v48, %v912_v47  ;;  %vm930_vm1 = vc.u32 %v2820_v40, %v2811_v12  ;;  %v437_v49 = vxor.u32 2147483648, %v436_v34 }
  0xed   : > { %vm2108_vm0 = vcmp.lt.s32.totalorder %v2107_v25, 0  ;;  %v932_v0 = vsel %vm930_vm1, %v931_v31, %v2812_v23  ;;  %v745_v46 = vand.u32 2147483647, %v744_v54  ;;  %v777_v11 = vor.u32 8388608, %v776_v52 }
  0xee   : > { %v2832_v60 = vsel %vm2108_vm0, 0, %v2107_v25  ;;  %vm780_vm2 = vcmp.gt.s32.totalorder %v779_v43, 0  ;;  %v933_v3 = vadd.s32 %v932_v0, %v928_v50  ;;  %v2837_v4 = vand.u32 8388607, %v3967_v44 }
  0xef   : > { %vm563_vm3 = vcmp.lt.s32.totalorder %v2555_v17, 0  ;;  %v533_v48 = vsub.s32 4294967266, %v2832_v60  ;;  %v781_v15 = vsel %vm780_vm2, %v779_v43, 0  ;;  %v2129_v22 = vadd.s32 4294967169, %v1085_v6 }
  0xf0   : > { %v2844_v2 = vsel %vm563_vm3, %v645_v1, %v2780_v51  ;;  %vm355_vm4 = vcmp.lt.s32.totalorder %v2558_v18, 0  ;;  %v747_v24 = vcvt.s32.f32 %v740_v39  ;;  %v934_v23 = vadd.s32 536870912, %v933_v3 }
  0xf1   : > { %v2849_v63 = vsel %vm355_vm4, %v437_v49, %v436_v34  ;;  %v513_v37 = vadd.s32 %v2753_v20, %v2759_v42  ;;  %v783_v33 = vand.u32 31, %v781_v15  ;;  %v2854_v36 = vmul.f32 %v2552_v14, %v302_v10 }
  0xf2   : > { %v2856_v13 = vmul.f32 %v747_v24, %v745_v46  ;;  %v2858_v45 = vshrl.u32 %v934_v23, 30  ;;  %v2860_v51 = vshll.u32 %v777_v11, 8  ;;  %v1089_v54 = vor.u32 8388608, %v2837_v4 }
  0xf3   : > { %v529_v47 = vsub.s32 32, %v2832_v60  ;;  %v534_v27 = vadd.s32 127, %v533_v48  ;;  %v784_v34 = vsub.s32 32, %v783_v33  ;;  %v1091_v26 = vadd.s32 1, %v2129_v22 }
  0xf4   : > { %4008 = vst [vmem:[#allocation2_spill] sm:$0xff] %v2858_v45  ;;  %v936_v25 = vshll.u32 %v2858_v45, 30  ;;  %v782_v20 = vshrl.u32 %v781_v15, 5  ;;  %v786_v42 = vshll.u32 %v3983_v53, %v783_v33  ;;  %v789_v31 = vshll.u32 %v3979_v55, %v783_v33 }
  0xf5   : > { %v787_v52 = vshrl.u32 %v3979_v55, %v784_v34  ;;  %v790_v1 = vshrl.u32 %v3977_v57, %v784_v34  ;;  %v792_v43 = vshll.u32 %v3977_v57, %v783_v33  ;;  %v793_v6 = vshrl.u32 %v3981_v59, %v784_v34 }
  0xf6   : > { %v2871_v39 = vsub.s32 %v933_v3, %v936_v25  ;;  %v795_v50 = vshll.u32 %v3981_v59, %v783_v33  ;;  %v796_v49 = vshrl.u32 %v3999_v61, %v784_v34  ;;  %v798_v0 = vshll.u32 %v3999_v61, %v783_v33 }
  0xf7   : > { %v788_v46 = vor.u32 %v787_v52, %v786_v42  ;;  %v791_v11 = vor.u32 %v790_v1, %v789_v31  ;;  %v794_v4 = vor.u32 %v793_v6, %v792_v43  ;;  %v799_v10 = vshrl.u32 %v3985_v5, %v784_v34 }
  0xf8   : > { %v939_v48 = vsub.s32 0, %v2871_v39  ;;  %v797_v15 = vor.u32 %v796_v49, %v795_v50  ;;  %vm1092_vm5 = vcmp.gt.s32.totalorder %v1091_v26, 0  ;;  %v980_v22 = vand.u32 2139095040, %v2854_v36 }
  0xf9   : > { %v535_v24 = vshll.u32 %v534_v27, 23  ;;  %v800_v3 = vor.u32 %v799_v10, %v798_v0  ;;  %vm801_vm6 = vcmp.lt.s32.totalorder %v782_v20, 1  ;;  %vm804_vm7 = vcmp.lt.s32.totalorder %v782_v20, 4  ;;  %v317_v10 = vpop.permute.xlu1 %316 }
  0xfa   : > { %v2122_v23 = vmin.u32 %v939_v48, %v2871_v39  ;;  %v785_v25 = vshrl.u32 %v3983_v53, %v784_v34  ;;  %v806_v33 = vsel %vm804_vm7, %v794_v4, 2102212464  ;;  %v809_v42 = vsel %vm801_vm6, %v788_v46, %v791_v11 }
  0xfb   : > { %vm803_vm8 = vcmp.lt.s32.totalorder %v782_v20, 3  ;;  %v810_v31 = vsel %vm804_vm7, %v797_v15, 920167782  ;;  %v813_v52 = vsel %vm801_vm6, %v791_v11, %v794_v4  ;;  %v814_v1 = vsel %vm804_vm7, %v800_v3, 1326507024 }
  0xfc   : > { %v941_v43 = vclz %v2122_v23  ;;  %vm802_vm9 = vcmp.lt.s32.totalorder %v782_v20, 2  ;;  %v805_v6 = vsel %vm801_vm6, %v785_v25, %v788_v46  ;;  %v811_v50 = vsel %vm803_vm8, %v794_v4, %v810_v31 }
  0xfd   : > { %v807_v49 = vsel %vm803_vm8, %v791_v11, %v806_v33  ;;  %v812_v44 = vsel %vm802_vm9, %v809_v42, %v811_v50  ;;  %v815_v27 = vsel %vm803_vm8, %v797_v15, %v814_v1  ;;  %v1093_v0 = vsel %vm1092_vm5, %v1091_v26, 0 }
  0xfe   : > { %v2123_v8 = vadd.s32 4294967294, %v941_v43  ;;  %v816_v48 = vsel %vm802_vm9, %v813_v52, %v815_v27  ;;  %v2883_v34 = vmul.u32.u64.low %v2860_v51, %v812_v44  ;;  %v2884_v38 = vmul.u32.u64.high %v2860_v51, %v812_v44, %v2883_v34 }
  0xff   : > { %v531_v32 = vshrl.u32 %v513_v37, %v529_v47  ;;  %v2888_v3 = vmul.u32.u64.low %v2860_v51, %v816_v48  ;;  %v2889_v23 = vmul.u32.u64.high %v2860_v51, %v816_v48, %v2888_v3  ;;  %v1095_v20 = vand.u32 31, %v1093_v0 }
 0x100   : > { %v749_v46 = vxor.u32 2147483648, %v2856_v13  ;;  %v808_v11 = vsel %vm802_vm9, %v805_v6, %v807_v49  ;;  %v3971_v4 = vand.u32 2147483647, %v2854_v36  ;;  %v2894_v26 = vmul.f32 %v2552_v14, %v317_v10 }
 0x101   : > { %v530_v15 = vshll.u32 %v2804_v56, %v2832_v60  ;;  %v2900_v44 = vadd.s32 %v2811_v12, %v2820_v40  ;;  %v1096_v37 = vsub.s32 32, %v1095_v20  ;;  %v2902_v47 = vshll.u32 %v1089_v54, 8 }
 0x102   : > { %v2904_v25 = vor.u32 4788187, %v535_v24  ;;  %vm2124_vm10 = vcmp.lt.s32.totalorder %v2123_v8, 0  ;;  %v827_v33 = vadd.s32 1, %v2884_v38  ;;  %v981_v42 = vshrl.u32 %v980_v22, 23 }
 0x103   : > { %v532_v31 = vor.u32 %v531_v32, %v530_v15  ;;  %v824_v14 = vmul.u32 %v2860_v51, %v808_v11  ;;  %vm826_vm11 = vc.u32 %v2889_v23, %v2883_v34  ;;  %v1099_v56 = vshrl.u32 %v3979_v55, %v1096_v37 }
 0x104   : > { %v828_v12 = vsel %vm826_vm11, %v827_v33, %v2884_v38  ;;  %v1098_v40 = vshll.u32 %v3983_v53, %v1095_v20  ;;  %v1101_v60 = vshll.u32 %v3979_v55, %v1095_v20  ;;  %v1102_v54 = vshrl.u32 %v3977_v57, %v1096_v37 }
 0x105   : > { %v2915_v24 = vsel %vm2124_vm10, 0, %v2123_v8  ;;  %v829_v52 = vadd.s32 %v828_v12, %v824_v14  ;;  %v1104_v32 = vshll.u32 %v3977_v57, %v1095_v20  ;;  %v1105_v51 = vshrl.u32 %v3981_v59, %v1096_v37 }
 0x106   : > { %v537_v22 = vand.u32 2147483647, %v2904_v25  ;;  %v1094_v1 = vshrl.u32 %v1093_v0, 5  ;;  %v1100_v43 = vor.u32 %v1099_v56, %v1098_v40  ;;  %v1103_v6 = vor.u32 %v1102_v54, %v1101_v60 }
 0x107   : > { %vm667_vm12 = vcmp.lt.s32.totalorder %v2569_v28, 0  ;;  %v830_v38 = vadd.s32 536870912, %v829_v52  ;;  %v1106_v50 = vor.u32 %v1105_v51, %v1104_v32  ;;  %v1107_v49 = vshll.u32 %v3981_v59, %v1095_v20 }
 0x108   : > { %v1108_v27 = vshrl.u32 %v3999_v61, %v1096_v37  ;;  %v949_v8 = vsub.s32 4294967266, %v2915_v24  ;;  %v1110_v10 = vshll.u32 %v3999_v61, %v1095_v20  ;;  %v1111_v48 = vshrl.u32 %v3985_v5, %v1096_v37 }
 0x109   : > { %v2125_v3 = vadd.s32 4294967169, %v981_v42  ;;  %v945_v11 = vsub.s32 32, %v2915_v24  ;;  %v2927_v0 = vshrl.u32 %v830_v38, 30  ;;  %v1097_v15 = vshrl.u32 %v3983_v53, %v1096_v37 }
 0x10a   : > { %v1109_v25 = vor.u32 %v1108_v27, %v1107_v49  ;;  %v1112_v33 = vor.u32 %v1111_v48, %v1110_v10  ;;  %vm1113_vm13 = vcmp.lt.s32.totalorder %v1094_v1, 1  ;;  %vm1115_vm14 = vcmp.lt.s32.totalorder %v1094_v1, 3 }
 0x10b   : > { %4009 = vst [vmem:[#allocation3_spill] sm:$0xff] %v2927_v0  ;;  %vm1116_vm15 = vcmp.lt.s32.totalorder %v1094_v1, 4  ;;  %v832_v14 = vshll.u32 %v2927_v0, 30  ;;  %v1121_v12 = vsel %vm1113_vm13, %v1100_v43, %v1103_v6  ;;  %v950_v20 = vadd.s32 127, %v949_v8 }
 0x10c   : > { %v1118_v56 = vsel %vm1116_vm15, %v1106_v50, 2102212464  ;;  %v1122_v40 = vsel %vm1116_vm15, %v1109_v25, 920167782  ;;  %vm1114_vm0 = vcmp.lt.s32.totalorder %v1094_v1, 2  ;;  %v1125_v42 = vsel %vm1113_vm13, %v1103_v6, %v1106_v50 }
 0x10d   : > { %v1123_v60 = vsel %vm1115_vm14, %v1106_v50, %v1122_v40  ;;  %v2931_v54 = vsub.s32 %v829_v52, %v832_v14  ;;  %v1117_v32 = vsel %vm1113_vm13, %v1097_v15, %v1100_v43  ;;  %v1126_v37 = vsel %vm1116_vm15, %v1112_v33, 1326507024 }
 0x10e   : > { %v1124_v51 = vsel %vm1114_vm0, %v1121_v12, %v1123_v60  ;;  %v1119_v38 = vsel %vm1115_vm14, %v1103_v6, %v1118_v56  ;;  %v1127_v49 = vsel %vm1115_vm14, %v1109_v25, %v1126_v37  ;;  %v984_v50 = vand.u32 8388607, %v3971_v4 }
 0x10f   : > { %v2935_v27 = vmul.u32.u64.low %v2902_v47, %v1124_v51  ;;  %v2936_v10 = vmul.u32.u64.high %v2902_v47, %v1124_v51, %v2935_v27  ;;  %v835_v48 = vsub.s32 0, %v2931_v54  ;;  %v1128_v8 = vsel %vm1114_vm0, %v1125_v42, %v1127_v49 }
 0x110   : > { %v987_v52 = vadd.s32 1, %v2125_v3  ;;  %v2948_v43 = vsel %vm667_vm12, %v749_v46, %v2856_v13  ;;  %v539_v6 = vcvt.s32.f32 %v532_v31  ;;  %v947_v33 = vshrl.u32 %v2900_v44, %v945_v11 }
 0x111   : > { %v2951_v15 = vmul.u32.u64.low %v2902_v47, %v1128_v8  ;;  %v2952_v25 = vmul.u32.u64.high %v2902_v47, %v1128_v8, %v2951_v15  ;;  %v2118_v14 = vmin.u32 %v835_v48, %v2931_v54  ;;  %v1120_v56 = vsel %vm1114_vm0, %v1117_v32, %v1119_v38 }
 0x112   : > { %vm988_vm1 = vcmp.gt.s32.totalorder %v987_v52, 0  ;;  %v2957_v3 = vmul.f32 %v539_v6, %v537_v22  ;;  %v951_v12 = vshll.u32 %v950_v20, 23  ;;  %v1139_v40 = vadd.s32 1, %v2936_v10 }
 0x113   : > { %v989_v60 = vsel %vm988_vm1, %v987_v52, 0  ;;  %v946_v13 = vshll.u32 %v2871_v39, %v2915_v24  ;;  %v837_v46 = vclz %v2118_v14  ;;  %v985_v31 = vor.u32 8388608, %v984_v50 }
 0x114   : > { %v991_v42 = vand.u32 31, %v989_v60  ;;  %v2964_v44 = vadd.s32 %v2883_v34, %v2889_v23  ;;  %v1136_v1 = vmul.u32 %v2902_v47, %v1120_v56  ;;  %vm1138_vm2 = vc.u32 %v2952_v25, %v2935_v27 }
 0x115   : > { %v3973_v22 = vand.u32 2147483647, %v2894_v26  ;;  %v2970_v11 = vor.u32 %v947_v33, %v946_v13  ;;  %v2119_v20 = vadd.s32 4294967294, %v837_v46  ;;  %v1140_v32 = vsel %vm1138_vm2, %v1139_v40, %v2936_v10 }
 0x116   : > { %v992_v39 = vsub.s32 32, %v991_v42  ;;  %v952_v24 = vor.u32 4788187, %v951_v12  ;;  %v1141_v51 = vadd.s32 %v1140_v32, %v1136_v1  ;;  %v994_v37 = vshll.u32 %v3983_v53, %v991_v42 }
 0x117   : > { %v997_v34 = vshll.u32 %v3979_v55, %v991_v42  ;;  %vm2120_vm5 = vcmp.lt.s32.totalorder %v2119_v20, 0  ;;  %v1000_v38 = vshll.u32 %v3977_v57, %v991_v42  ;;  %v990_v52 = vshrl.u32 %v989_v60, 5 }
 0x118   : > { %v995_v23 = vshrl.u32 %v3979_v55, %v992_v39  ;;  %v998_v47 = vshrl.u32 %v3977_v57, %v992_v39  ;;  %v2978_v49 = vsel %vm2120_vm5, 0, %v2119_v20  ;;  %v1142_v48 = vadd.s32 536870912, %v1141_v51 }
 0x119   : > { %v1001_v8 = vshrl.u32 %v3981_v59, %v992_v39  ;;  %v1004_v10 = vshrl.u32 %v3999_v61, %v992_v39  ;;  %v845_v50 = vsub.s32 4294967266, %v2978_v49  ;;  %v1003_v6 = vshll.u32 %v3981_v59, %v991_v42 }
 0x11a   : > { %v1292_v15 = vand.u32 2139095040, %v2894_v26  ;;  %v2985_v33 = vshrl.u32 %v1142_v48, 30  ;;  %v996_v14 = vor.u32 %v995_v23, %v994_v37  ;;  %v999_v56 = vor.u32 %v998_v47, %v997_v34 }
 0x11b   : > { %v1002_v12 = vor.u32 %v1001_v8, %v1000_v38  ;;  %v953_v40 = vand.u32 2147483647, %v952_v24  ;;  %v1005_v13 = vor.u32 %v1004_v10, %v1003_v6  ;;  %v1006_v46 = vshll.u32 %v3999_v61, %v991_v42 }
 0x11c   : > { %4010 = vst [vmem:[#allocation4_spill] sm:$0xff] %v2985_v33  ;;  %v1007_v1 = vshrl.u32 %v3985_v5, %v992_v39  ;;  %v846_v20 = vadd.s32 127, %v845_v50  ;;  %v1144_v32 = vshll.u32 %v2985_v33, 30  ;;  %v1025_v4 = vshll.u32 %v985_v31, 8 }
 0x11d   : > { %v1296_v60 = vand.u32 8388607, %v3973_v22  ;;  %vm1009_vm6 = vcmp.lt.s32.totalorder %v990_v52, 1  ;;  %vm1012_vm7 = vcmp.lt.s32.totalorder %v990_v52, 4  ;;  %v1293_v48 = vshrl.u32 %v1292_v15, 23 }
 0x11e   : > { %v1008_v19 = vor.u32 %v1007_v1, %v1006_v46  ;;  %v2992_v37 = vsub.s32 %v1141_v51, %v1144_v32  ;;  %v993_v24 = vshrl.u32 %v3983_v53, %v992_v39  ;;  %v1014_v34 = vsel %vm1012_vm7, %v1002_v12, 2102212464  ;;  %v312_v51 = vpop.permute.xlu0 %311 }
 0x11f   : > { %v1017_v42 = vsel %vm1009_vm6, %v996_v14, %v999_v56  ;;  %v841_v23 = vsub.s32 32, %v2978_v49  ;;  %vm1010_vm8 = vcmp.lt.s32.totalorder %v990_v52, 2  ;;  %vm1011_vm9 = vcmp.lt.s32.totalorder %v990_v52, 3 }
 0x120   : > { %v1018_v31 = vsel %vm1012_vm7, %v1005_v13, 920167782  ;;  %v847_v47 = vshll.u32 %v846_v20, 23  ;;  %v1147_v38 = vsub.s32 0, %v2992_v37  ;;  %v1021_v10 = vsel %vm1009_vm6, %v999_v56, %v1002_v12 }
 0x121   : > { %v1019_v8 = vsel %vm1011_vm9, %v1002_v12, %v1018_v31  ;;  %v1013_v50 = vsel %vm1009_vm6, %v993_v24, %v996_v14  ;;  %v1015_v39 = vsel %vm1011_vm9, %v999_v56, %v1014_v34  ;;  %v1022_v15 = vsel %vm1012_vm7, %v1008_v19, 1326507024  ;;  %v3014_v14 = vld [vmem:[%s3961_s1] ss:$0 sm:$0xff] }
 0x122   : > { %v1020_v6 = vsel %vm1010_vm8, %v1017_v42, %v1019_v8  ;;  %v2130_v46 = vmin.u32 %v1147_v38, %v2992_v37  ;;  %v1023_v1 = vsel %vm1011_vm9, %v1005_v13, %v1022_v15  ;;  %v955_v20 = vcvt.s32.f32 %v2970_v11 }
 0x123   : > { %v3005_v32 = vmul.u32.u64.low %v1025_v4, %v1020_v6  ;;  %v3006_v22 = vmul.u32.u64.high %v1025_v4, %v1020_v6, %v3005_v32  ;;  %v1024_v31 = vsel %vm1010_vm8, %v1021_v10, %v1023_v1  ;;  %v2137_v12 = vadd.s32 4294967169, %v1293_v48 }
 0x124   : > { %v3017_v56 = vmul.f32 %v3014_v14, %v312_v51  ;;  %v1149_v13 = vclz %v2130_v46  ;;  %v3020_v24 = vmul.u32.u64.low %v1025_v4, %v1024_v31  ;;  %v3021_v34 = vmul.u32.u64.high %v1025_v4, %v1024_v31, %v3020_v24 }
 0x125   : > { %v3023_v42 = vmul.f32 %v955_v20, %v953_v40  ;;  %v843_v11 = vshrl.u32 %v2964_v44, %v841_v23  ;;  %v1016_v48 = vsel %vm1010_vm8, %v1013_v50, %v1015_v39  ;;  %v1299_v38 = vadd.s32 1, %v2137_v12 }
 0x126   : > { %v3027_v8 = vor.u32 4788187, %v847_v47  ;;  %v2131_v10 = vadd.s32 4294967294, %v1149_v13  ;;  %v1035_v6 = vadd.s32 1, %v3006_v22  ;;  %v1297_v51 = vor.u32 8388608, %v1296_v60 }
 0x127   : > { %v842_v15 = vshll.u32 %v2931_v54, %v2978_v49  ;;  %v1137_v46 = vadd.s32 %v2935_v27, %v2952_v25  ;;  %vm1300_vm10 = vcmp.gt.s32.totalorder %v1299_v38, 0  ;;  %v3974_v40 = vand.u32 2147483647, %v3017_v56 }
 0x128   : > { %vm2132_vm11 = vcmp.lt.s32.totalorder %v2131_v10, 0  ;;  %v1032_v44 = vmul.u32 %v1025_v4, %v1016_v48  ;;  %vm1034_vm13 = vc.u32 %v3021_v34, %v3005_v32  ;;  %v1301_v52 = vsel %vm1300_vm10, %v1299_v38, 0 }
 0x129   : > { %v3037_v23 = vor.u32 %v843_v11, %v842_v15  ;;  %v1152_v47 = vsel %vm2132_vm11, 0, %v2131_v10  ;;  %v1036_v60 = vsel %vm1034_vm13, %v1035_v6, %v3006_v22  ;;  %v1303_v50 = vand.u32 31, %v1301_v52 }
 0x12a   : > { %v1157_v49 = vsub.s32 4294967266, %v1152_v47  ;;  %v1037_v39 = vadd.s32 %v1036_v60, %v1032_v44  ;;  %v3041_v27 = vshll.u32 %v1297_v51, 8  ;;  %v1153_v25 = vsub.s32 32, %v1152_v47 }
 0x12b   : > { %v1304_v1 = vsub.s32 32, %v1303_v50  ;;  %v1188_v4 = vand.u32 2139095040, %v3017_v56  ;;  %v3046_v20 = vand.u32 8388607, %v3974_v40  ;;  %v1306_v12 = vshll.u32 %v3983_v53, %v1303_v50 }
 0x12c   : > { %v1038_v31 = vadd.s32 536870912, %v1037_v39  ;;  %v1309_v22 = vshll.u32 %v3979_v55, %v1303_v50  ;;  %v1312_v13 = vshll.u32 %v3977_v57, %v1303_v50  ;;  %v1158_v24 = vadd.s32 127, %v1157_v49 }
 0x12d   : > { %v1307_v11 = vshrl.u32 %v3979_v55, %v1304_v1  ;;  %v1310_v48 = vshrl.u32 %v3977_v57, %v1304_v1  ;;  %v1313_v38 = vshrl.u32 %v3981_v59, %v1304_v1  ;;  %v1302_v6 = vshrl.u32 %v1301_v52, 5 }
 0x12e   : > { %v3054_v10 = vshrl.u32 %v1038_v31, 30  ;;  %v1315_v51 = vshll.u32 %v3981_v59, %v1303_v50  ;;  %v1316_v15 = vshrl.u32 %v3999_v61, %v1304_v1  ;;  %v1189_v35 = vshrl.u32 %v1188_v4, 23 }
 0x12f   : > { %v1308_v44 = vor.u32 %v1307_v11, %v1306_v12  ;;  %v1311_v60 = vor.u32 %v1310_v48, %v1309_v22  ;;  %v1314_v40 = vor.u32 %v1313_v38, %v1312_v13  ;;  %vm459_vm14 = vcmp.lt.s32.totalorder %v2572_v30, 0 }
 0x130   : > { %4011 = vst [vmem:[#allocation5_spill] sm:$0xff] %v3054_v10  ;;  %v1154_v49 = vshll.u32 %v2992_v37, %v1152_v47  ;;  %v1155_v21 = vshrl.u32 %v1137_v46, %v1153_v25  ;;  %v1040_v57 = vshll.u32 %v3054_v10, 30  ;;  %v1317_v55 = vor.u32 %v1316_v15, %v1315_v51 }
 0x131   : > { %v1159_v54 = vshll.u32 %v1158_v24, 23  ;;  %v1305_v31 = vshrl.u32 %v3983_v53, %v1304_v1  ;;  %v1318_v52 = vshll.u32 %v3999_v61, %v1303_v50  ;;  %v1319_v59 = vshrl.u32 %v3985_v5, %v1304_v1 }
 0x132   : > { %v3064_v19 = vsub.s32 %v1037_v39, %v1040_v57  ;;  %vm1321_vm15 = vcmp.lt.s32.totalorder %v1302_v6, 1  ;;  %vm1323_vm0 = vcmp.lt.s32.totalorder %v1302_v6, 3  ;;  %vm1324_vm1 = vcmp.lt.s32.totalorder %v1302_v6, 4 }
 0x133   : > { %v1320_v4 = vor.u32 %v1319_v59, %v1318_v52  ;;  %v1326_v12 = vsel %vm1324_vm1, %v1314_v40, 2102212464  ;;  %v1329_v37 = vsel %vm1321_vm15, %v1308_v44, %v1311_v60  ;;  %v1330_v46 = vsel %vm1324_vm1, %v1317_v55, 920167782 }
 0x134   : > { %v1156_v47 = vor.u32 %v1155_v21, %v1154_v49  ;;  %v1043_v25 = vsub.s32 0, %v3064_v19  ;;  %vm1322_vm2 = vcmp.lt.s32.totalorder %v1302_v6, 2  ;;  %v1331_v22 = vsel %vm1323_vm0, %v1314_v40, %v1330_v46 }
 0x135   : > { %v1160_v13 = vor.u32 4788187, %v1159_v54  ;;  %v1332_v50 = vsel %vm1322_vm2, %v1329_v37, %v1331_v22  ;;  %v1333_v57 = vsel %vm1321_vm15, %v1311_v60, %v1314_v40  ;;  %v1334_v39 = vsel %vm1324_vm1, %v1320_v4, 1326507024 }
 0x136   : > { %v2126_v1 = vmin.u32 %v1043_v25, %v3064_v19  ;;  %v1325_v59 = vsel %vm1321_vm15, %v1305_v31, %v1308_v44  ;;  %v1327_v24 = vsel %vm1323_vm0, %v1311_v60, %v1326_v12  ;;  %v1335_v11 = vsel %vm1323_vm0, %v1317_v55, %v1334_v39  ;;  %v327_v44 = vpop.permute.xlu1 %326  ;;  %v322_v25 = vpop.permute.xlu0 %321 }
 0x137   : > { %v1336_v21 = vsel %vm1322_vm2, %v1333_v57, %v1335_v11  ;;  %v3077_v48 = vmul.u32.u64.low %v3041_v27, %v1332_v50  ;;  %v3078_v38 = vmul.u32.u64.high %v3041_v27, %v1332_v50, %v3077_v48  ;;  %v2133_v54 = vadd.s32 4294967169, %v1189_v35 }
 0x138   : > { %v851_v51 = vcvt.s32.f32 %v3037_v23  ;;  %v1045_v40 = vclz %v2126_v1  ;;  %v3083_v15 = vmul.u32.u64.low %v3041_v27, %v1336_v21  ;;  %v3084_v49 = vmul.u32.u64.high %v3041_v27, %v1336_v21, %v3083_v15 }
 0x139   : > { %v4012_v60 = vxor.u32 2147483648, %v2957_v3  ;;  %v1328_v52 = vsel %vm1322_vm2, %v1325_v59, %v1327_v24  ;;  %v1195_v35 = vadd.s32 1, %v2133_v54  ;;  %v4013_v23 = vand.u32 2147483647, %v3027_v8 }
 0x13a   : > { %v1161_v12 = vand.u32 2147483647, %v1160_v13  ;;  %v2127_v37 = vadd.s32 4294967294, %v1045_v40  ;;  %v1193_v46 = vor.u32 8388608, %v3046_v20  ;;  %v1163_v22 = vcvt.s32.f32 %v1156_v47 }
 0x13b   : > { %v3091_v55 = vsel %vm459_vm14, %v4012_v60, %v2957_v3  ;;  %v3097_v4 = vmul.f32 %v851_v51, %v4013_v23  ;;  %v1347_v50 = vadd.s32 1, %v3078_v38  ;;  %vm1196_vm5 = vcmp.gt.s32.totalorder %v1195_v35, 0 }
 0x13c   : > { %v3102_v3 = vmul.f32 %v3014_v14, %v327_v44  ;;  %vm2128_vm6 = vcmp.lt.s32.totalorder %v2127_v37, 0  ;;  %v1344_v6 = vmul.u32 %v3041_v27, %v1328_v52  ;;  %vm1346_vm7 = vc.u32 %v3084_v49, %v3077_v48 }
 0x13d   : > { %v1197_v8 = vsel %vm1196_vm5, %v1195_v35, 0  ;;  %v3107_v57 = vsel %vm2128_vm6, 0, %v2127_v37  ;;  %v1348_v13 = vsel %vm1346_vm7, %v1347_v50, %v3078_v38  ;;  %v3111_v47 = vmul.f32 %v3014_v14, %v322_v25 }
 0x13e   : > { %v1199_v20 = vand.u32 31, %v1197_v8  ;;  %v3113_v39 = vmul.f32 %v1163_v22, %v1161_v12  ;;  %v1033_v1 = vadd.s32 %v3005_v32, %v3021_v34  ;;  %v1349_v59 = vadd.s32 %v1348_v13, %v1344_v6 }
 0x13f   : > { %v3117_v24 = vshll.u32 %v1193_v46, 8  ;;  %v1049_v27 = vsub.s32 32, %v3107_v57  ;;  %v3995_v21 = vand.u32 2147483647, %v3102_v3  ;;  %v1500_v54 = vand.u32 2139095040, %v3102_v3 }
 0x140   : > { %v1200_v11 = vsub.s32 32, %v1199_v20  ;;  %v1053_v38 = vsub.s32 4294967266, %v3107_v57  ;;  %v1350_v51 = vadd.s32 536870912, %v1349_v59  ;;  %v1202_v40 = vshll.u32 %v3983_v53, %v1199_v20 }
 0x141   : > { %v4014_v15 = vmov 2475754826   ;;  %v4015_v32 = vmov 2131351028   ;;  %v4016_v35 = vmov 2102212464   ;;  %v1051_v33 = vshrl.u32 %v1033_v1, %v1049_v27 }
 0x142   : > { %v1205_v44 = vshll.u32 %v4014_v15, %v1199_v20  ;;  %v1203_v60 = vshrl.u32 %v4014_v15, %v1200_v11  ;;  %v1206_v34 = vshrl.u32 %v4015_v32, %v1200_v11  ;;  %v1208_v52 = vshll.u32 %v4015_v32, %v1199_v20 }
 0x143   : > { %v1209_v23 = vshrl.u32 %v4016_v35, %v1200_v11  ;;  %v3129_v12 = vshrl.u32 %v1350_v51, 30  ;;  %v1198_v37 = vshrl.u32 %v1197_v8, 5  ;;  %v1211_v46 = vshll.u32 %v4016_v35, %v1199_v20 }
 0x144   : > { %v1212_v25 = vshrl.u32 %v3999_v61, %v1200_v11  ;;  %v1204_v22 = vor.u32 %v1203_v60, %v1202_v40  ;;  %v1207_v50 = vor.u32 %v1206_v34, %v1205_v44  ;;  %v3996_v13 = vand.u32 2147483647, %v3111_v47 }
 0x145   : > { %4017 = vst [vmem:[#allocation6_spill] sm:$0xff] %v3129_v12  ;;  %v1210_v6 = vor.u32 %v1209_v23, %v1208_v52  ;;  %v1352_v31 = vshll.u32 %v3129_v12, 30  ;;  %v3137_v5 = vand.u32 8388607, %v3995_v21  ;;  %v1396_v51 = vand.u32 2139095040, %v3111_v47  ;;  %v1713_v12 = vld [vmem:[%s3962_s2 + $0x40] sm:$0xff] }
 0x146   : > { %v1213_v53 = vor.u32 %v1212_v25, %v1211_v46  ;;  %v1054_v8 = vadd.s32 127, %v1053_v38  ;;  %v1214_v10 = vshll.u32 %v3999_v61, %v1199_v20  ;;  %v4018_v45 = vmov 1326507024  }
 0x147   : > { %v1215_v0 = vshrl.u32 %v4018_v45, %v1200_v11  ;;  %v3142_v40 = vsub.s32 %v1349_v59, %v1352_v31  ;;  %vm1217_vm8 = vcmp.lt.s32.totalorder %v1198_v37, 1  ;;  %vm1219_vm9 = vcmp.lt.s32.totalorder %v1198_v37, 3 }
 0x148   : > { %vm1220_vm10 = vcmp.lt.s32.totalorder %v1198_v37, 4  ;;  %v1225_v34 = vsel %vm1217_vm8, %v1204_v22, %v1207_v50  ;;  %v4019_v46 = vmov 683565275   ;;  %vm1218_vm11 = vcmp.lt.s32.totalorder %v1198_v37, 2  ;;  %v1719_v37 = vld [vmem:[%s3962_s2 + $0x70] sm:$0xff] }
 0x149   : > { %v1216_v44 = vor.u32 %v1215_v0, %v1214_v10  ;;  %v1222_v60 = vsel %vm1220_vm10, %v1210_v6, 2102212464  ;;  %v1226_v52 = vsel %vm1220_vm10, %v1213_v53, 920167782  ;;  %v1355_v23 = vsub.s32 0, %v3142_v40 }
 0x14a   : > { %v1201_v25 = vshrl.u32 %v4019_v46, %v1200_v11  ;;  %v1227_v1 = vsel %vm1219_vm9, %v1210_v6, %v1226_v52  ;;  %v1055_v20 = vshll.u32 %v1054_v8, 23  ;;  %v1229_v31 = vsel %vm1217_vm8, %v1207_v50, %v1210_v6 }
 0x14b   : > { %v1228_v27 = vsel %vm1218_vm11, %v1225_v34, %v1227_v1  ;;  %v1230_v59 = vsel %vm1220_vm10, %v1216_v44, 1326507024  ;;  %v2138_v38 = vmin.u32 %v1355_v23, %v3142_v40  ;;  %v1223_v10 = vsel %vm1219_vm9, %v1207_v50, %v1222_v60 }
 0x14c   : > { %v1221_v0 = vsel %vm1217_vm8, %v1201_v25, %v1204_v22  ;;  %v1231_v21 = vsel %vm1219_vm9, %v1213_v53, %v1230_v59  ;;  %vm875_vm13 = vcmp.lt.s32.totalorder %v2714_v58, 0  ;;  %vm771_vm15 = vcmp.lt.s32.totalorder %v2775_v62, 0 }
 0x14d   : > { %vm1083_vm0 = vcmp.lt.s32.totalorder %v2787_v9, 0  ;;  %v1232_v11 = vsel %vm1218_vm11, %v1229_v31, %v1231_v21  ;;  %v3159_v8 = vmul.u32.u64.low %v3117_v24, %v1228_v27  ;;  %v3160_v6 = vmul.u32.u64.high %v3117_v24, %v1228_v27, %v3159_v8  ;;  %v1720_v21 = vld [vmem:[%s3962_s2 + $0x78] sm:$0xff] }
 0x14e   : > { %v1501_v44 = vshrl.u32 %v1500_v54, 23  ;;  %v1050_v22 = vshll.u32 %v3064_v19, %v3107_v57  ;;  %v1357_v50 = vclz %v2138_v38  ;;  %v1056_v34 = vor.u32 4788187, %v1055_v20 }
 0x14f   : > { %v3166_v53 = vmul.u32.u64.low %v3117_v24, %v1232_v11  ;;  %v3167_v60 = vmul.u32.u64.high %v3117_v24, %v1232_v11, %v3166_v53  ;;  %v1224_v52 = vsel %vm1218_vm11, %v1221_v0, %v1223_v10  ;;  %v1397_v25 = vshrl.u32 %v1396_v51, 23  ;;  %v1718_v10 = vld [vmem:[%s3962_s2 + $0x68] sm:$0xff] }
 0x150   : > { %v2145_v23 = vadd.s32 4294967169, %v1501_v44  ;;  %v1052_v1 = vor.u32 %v1051_v33, %v1050_v22  ;;  %v2139_v27 = vadd.s32 4294967294, %v1357_v50  ;;  %v853_v54 = vxor.u32 2147483648, %v3097_v4  ;;  %v332_v50 = vpop.permute.xlu0 %331 }
 0x151   : > { %v1243_v19 = vadd.s32 1, %v3160_v6  ;;  %v2141_v31 = vadd.s32 4294967169, %v1397_v25  ;;  %v4001_v59 = vmov 0.0   ;;  %vm2497_vm1 = vmmov 0  }
 0x152   : > { %v1507_v57 = vadd.s32 1, %v2145_v23  ;;  %2215 = vmatprep.subr.mxu0 %v4001_v59  ;;  %2247 = vmatprep.mubr.msk.f32.mxu0 %vm2497_vm1, %v4001_v59  ;;  %v1165_v33 = vxor.u32 2147483648, %v3113_v39  ;;  %vm2140_vm2 = vcmp.lt.s32.totalorder %v2139_v27, 0  ;;  %v1240_v51 = vmul.u32 %v3117_v24, %v1224_v52  ;;  %v1717_v23 = vld [vmem:[%s3962_s2 + $0x60] sm:$0xff] }
 0x153   : > { %vm1242_vm5 = vc.u32 %v3167_v60, %v3159_v8  ;;  %2216 = vmatpush3.msra.mxu0 %v1720_v21  ;;  %2286 = vmatprep.subr.mxu1 %v4001_v59  ;;  %v1057_v20 = vand.u32 2147483647, %v1056_v34  ;;  %v3186_v38 = vsel %vm2140_vm2, 0, %v2139_v27  ;;  %v1059_v24 = vcvt.s32.f32 %v1052_v1 }
 0x154   : > { %v1244_v0 = vsel %vm1242_vm5, %v1243_v19, %v3160_v6  ;;  %vm1508_vm6 = vcmp.gt.s32.totalorder %v1507_v57, 0  ;;  %2217 = vmatprep.subr.mxu0 %v4001_v59  ;;  %2318 = vmatprep.mubr.msk.f32.mxu1 %vm2497_vm1, %v4001_v59  ;;  %v1505_v44 = vor.u32 8388608, %v3137_v5  ;;  %v3198_v22 = vand.u32 8388607, %v3996_v13 }
 0x155   : > { %v1245_v11 = vadd.s32 %v1244_v0, %v1240_v51  ;;  %2218 = vmatpush3.msra.mxu0 %v1719_v37  ;;  %v1361_v6 = vsub.s32 32, %v3186_v38  ;;  %v1365_v53 = vsub.s32 4294967266, %v3186_v38  ;;  %v1509_v34 = vsel %vm1508_vm6, %v1507_v57, 0  ;;  %v1715_v51 = vld [vmem:[%s3962_s2 + $0x50] sm:$0xff] }
 0x156   : > { %v1403_v52 = vadd.s32 1, %v2141_v31  ;;  %2219 = vmatprep.subr.mxu0 %v4001_v59  ;;  %v4020_v5 = vxor.u32 2147483648, %v3023_v42  ;;  %v3216_v21 = vsel %vm771_vm15, %v853_v54, %v3097_v4  ;;  %v3221_v1 = vsel %vm1083_vm0, %v1165_v33, %v3113_v39  ;;  %v1716_v4 = vld [vmem:[%s3962_s2 + $0x58] sm:$0xff] }
 0x157   : > { %4021 = vst [vmem:[#allocation7_spill] sm:$0xff] %v3221_v1  ;;  %v1246_v27 = vadd.s32 536870912, %v1245_v11  ;;  %2220 = vmatpush3.msra.mxu0 %v1718_v10  ;;  %v3223_v19 = vmul.f32 %v1059_v24, %v1057_v20  ;;  %v1345_v57 = vadd.s32 %v3077_v48, %v3084_v49  ;;  %v1511_v31 = vand.u32 31, %v1509_v34 }
 0x158   : > { %v3211_v25 = vsel %vm875_vm13, %v4020_v5, %v3023_v42  ;;  %v3228_v42 = vmul.f32 %v3014_v14, %v332_v50  ;;  %2221 = vmatprep.subr.mxu0 %v4001_v59  ;;  %v3238_v37 = vshll.u32 %v1505_v44, 8  ;;  %v3243_v14 = vadd.s32 127, %v1365_v53 }
 0x159   : > { %v3236_v54 = vshrl.u32 %v1246_v27, 30  ;;  %2222 = vmatpush3.msra.mxu0 %v1717_v23  ;;  %v3241_v48 = vshrl.u32 %v1345_v57, %v1361_v6  ;;  %v1512_v49 = vsub.s32 32, %v1511_v31  ;;  %vm1404_vm7 = vcmp.gt.s32.totalorder %v1403_v52, 0 }
 0x15a   : > { %2223 = vmatprep.subr.mxu0 %v4001_v59  ;;  %v3250_v0 = vshrl.u32 %v1509_v34, 5  ;;  %v1514_v10 = vshll.u32 %v4019_v46, %v1511_v31  ;;  %v1517_v24 = vshll.u32 %v4014_v15, %v1511_v31  ;;  %v1520_v6 = vshll.u32 %v4015_v32, %v1511_v31  ;;  %v1714_v34 = vld [vmem:[%s3962_s2 + $0x48] sm:$0xff] }
 0x15b   : > { %4022 = vst [vmem:[#allocation8_spill] sm:$0xff] %v3236_v54  ;;  %v1248_v20 = vshll.u32 %v3236_v54, 30  ;;  %2224 = vmatpush3.msra.mxu0 %v1716_v4  ;;  %v1515_v44 = vshrl.u32 %v4014_v15, %v1512_v49  ;;  %v1518_v50 = vshrl.u32 %v4015_v32, %v1512_v49  ;;  %v1521_v53 = vshrl.u32 %v4016_v35, %v1512_v49 }
 0x15c   : > { %2225 = vmatprep.subr.mxu0 %v4001_v59  ;;  %v1523_v5 = vshll.u32 %v4016_v35, %v1511_v31  ;;  %v1524_v27 = vshrl.u32 %v3999_v61, %v1512_v49  ;;  %v1526_v57 = vshll.u32 %v3999_v61, %v1511_v31  ;;  %v1527_v39 = vshrl.u32 %v4018_v45, %v1512_v49  ;;  %v1885_v31 = vld [vmem:[%s3964_s4 + $0x70] sm:$0xff] }
 0x15d   : > { %v3262_v23 = vsub.s32 %v1245_v11, %v1248_v20  ;;  %2226 = vmatpush3.msra.mxu0 %v1715_v51  ;;  %v1516_v4 = vor.u32 %v1515_v44, %v1514_v10  ;;  %v1519_v13 = vor.u32 %v1518_v50, %v1517_v24  ;;  %v1522_v33 = vor.u32 %v1521_v53, %v1520_v6  ;;  %v1886_v11 = vld [vmem:[%s3964_s4 + $0x78] sm:$0xff]  ;;  %v1711_v53 = vld [vmem:[%s3962_s2 + $0x30] sm:$0xff] }
 0x15e   : > { %2227 = vmatprep.subr.mxu0 %v4001_v59  ;;  %v1367_v51 = vshll.u32 %v3243_v14, 23  ;;  %v1525_v10 = vor.u32 %v1524_v27, %v1523_v5  ;;  %v1405_v24 = vsel %vm1404_vm7, %v1403_v52, 0  ;;  %2287 = vmatpush3.msra.mxu1 %v1886_v11  ;;  %v1513_v44 = vshrl.u32 %v4019_v46, %v1512_v49  ;;  %v1712_v14 = vld [vmem:[%s3962_s2 + $0x38] sm:$0xff]  ;;  %v1884_v52 = vld [vmem:[%s3964_s4 + $0x68] sm:$0xff] }
 0x15f   : > { %v1251_v20 = vsub.s32 0, %v3262_v23  ;;  %2228 = vmatpush3.msra.mxu0 %v1714_v34  ;;  %v1528_v50 = vor.u32 %v1527_v39, %v1526_v57  ;;  %vm1529_vm8 = vcmp.lt.s32.totalorder %v3250_v0, 1  ;;  %vm1532_vm9 = vcmp.lt.s32.totalorder %v3250_v0, 4  ;;  %2288 = vmatprep.subr.mxu1 %v4001_v59 }
 0x160   : > { %2229 = vmatprep.subr.mxu0 %v4001_v59  ;;  %vm1530_vm10 = vcmp.lt.s32.totalorder %v3250_v0, 2  ;;  %v1534_v39 = vsel %vm1532_vm9, %v1522_v33, 2102212464  ;;  %v1537_v49 = vsel %vm1529_vm8, %v1516_v4, %v1519_v13  ;;  %2289 = vmatpush3.msra.mxu1 %v1885_v31  ;;  %vm1531_vm11 = vcmp.lt.s32.totalorder %v3250_v0, 3 }
 0x161   : > { %v2134_v6 = vmin.u32 %v1251_v20, %v3262_v23  ;;  %2230 = vmatpush3.msra.mxu0 %v1713_v12  ;;  %v1538_v34 = vsel %vm1532_vm9, %v1525_v10, 920167782  ;;  %v1541_v5 = vsel %vm1529_vm8, %v1519_v13, %v1522_v33  ;;  %v1542_v27 = vsel %vm1532_vm9, %v1528_v50, 1326507024  ;;  %2290 = vmatprep.subr.mxu1 %v4001_v59  ;;  %v1883_v12 = vld [vmem:[%s3964_s4 + $0x60] sm:$0xff] }
 0x162   : > { %2231 = vmatprep.subr.mxu0 %v4001_v59  ;;  %v1533_v11 = vsel %vm1529_vm8, %v1513_v44, %v1516_v4  ;;  %v1535_v31 = vsel %vm1531_vm11, %v1519_v13, %v1534_v39  ;;  %v1539_v20 = vsel %vm1531_vm11, %v1522_v33, %v1538_v34  ;;  %2291 = vmatpush3.msra.mxu1 %v1884_v52  ;;  %v3319_v59 = vor.u32 4788187, %v1367_v51  ;;  %v1710_v33 = vld [vmem:[%s3962_s2 + $0x28] sm:$0xff] }
 0x163   : > { %v1253_v57 = vclz %v2134_v6  ;;  %2232 = vmatpush3.msra.mxu0 %v1712_v14  ;;  %v4023_v50 = vshll.u32 %v3142_v40, %v3186_v38  ;;  %v1540_v6 = vsel %vm1530_vm10, %v1537_v49, %v1539_v20  ;;  %v1543_v4 = vsel %vm1531_vm11, %v1525_v10, %v1542_v27  ;;  %v1882_v40 = vld [vmem:[%s3964_s4 + $0x58] sm:$0xff]  ;;  %v1709_v49 = vld [vmem:[%s3962_s2 + $0x20] sm:$0xff] }
 0x164   : > { %v4024_v13 = vmov 0.0   ;;  %v3336_v51 = vmul.u32.u64.low %v3238_v37, %v1540_v6  ;;  %v3337_v44 = vmul.u32.u64.high %v3238_v37, %v1540_v6, %v3336_v51  ;;  %v1536_v10 = vsel %vm1530_vm10, %v1533_v11, %v1535_v31  ;;  %v1705_v31 = vld [vmem:[%s3962_s2] sm:$0xff] }
 0x165   : > { %v3317_v61 = vor.u32 %v3241_v48, %v4023_v50  ;;  %2233 = vmatprep.subr.mxu0 %v4024_v13  ;;  %2292 = vmatprep.subr.mxu1 %v4024_v13  ;;  %v2135_v38 = vadd.s32 4294967294, %v1253_v57  ;;  %v1544_v48 = vsel %vm1530_vm10, %v1541_v5, %v1543_v4  ;;  %v1407_v39 = vand.u32 31, %v1405_v24 }
 0x166   : > { %2234 = vmatpush3.msra.mxu0 %v1711_v53  ;;  %2293 = vmatpush3.msra.mxu1 %v1883_v12  ;;  %v3343_v14 = vmul.u32.u64.low %v3238_v37, %v1544_v48  ;;  %v3344_v52 = vmul.u32.u64.high %v3238_v37, %v1544_v48, %v3343_v14  ;;  %v1881_v53 = vld [vmem:[%s3964_s4 + $0x50] sm:$0xff]  ;;  %v3357_v34 = vadd.s32 %v3159_v8, %v3167_v60  ;;  %v3359_v5 = vshrl.u32 %v1405_v24, 5  ;;  %v1708_v8 = vld [vmem:[%s3962_s2 + $0x18] sm:$0xff] }
 0x167   : > { %2235 = vmatprep.subr.mxu0 %v4024_v13  ;;  %2294 = vmatprep.subr.mxu1 %v4024_v13  ;;  %vm2136_vm2 = vcmp.lt.s32.totalorder %v2135_v38, 0  ;;  %v1408_v27 = vsub.s32 32, %v1407_v39  ;;  %v4025_v12 = vor.u32 8388608, %v3198_v22  ;;  %v1552_v22 = vmul.u32 %v3238_v37, %v1536_v10  ;;  %v1707_v37 = vld [vmem:[%s3962_s2 + $0x10] sm:$0xff] }
 0x168   : > { %2236 = vmatpush3.msra.mxu0 %v1710_v33  ;;  %2295 = vmatpush3.msra.mxu1 %v1882_v40  ;;  %v1555_v20 = vadd.s32 1, %v3337_v44  ;;  %v3377_v50 = vsel %vm2136_vm2, 0, %v2135_v38  ;;  %vm1554_vm5 = vc.u32 %v3344_v52, %v3336_v51  ;;  %v1410_v6 = vshll.u32 %v4019_v46, %v1407_v39  ;;  %v1880_v33 = vld [vmem:[%s3964_s4 + $0x48] sm:$0xff] }
 0x169   : > { %v3363_v57 = vshll.u32 %v4025_v12, 8  ;;  %2237 = vmatprep.subr.mxu0 %v4024_v13  ;;  %2296 = vmatprep.subr.mxu1 %v4024_v13  ;;  %v1411_v4 = vshrl.u32 %v4014_v15, %v1408_v27  ;;  %v1413_v38 = vshll.u32 %v4014_v15, %v1407_v39  ;;  %v1414_v48 = vshrl.u32 %v4015_v32, %v1408_v27 }
 0x16a   : > { %2238 = vmatpush3.msra.mxu0 %v1709_v49  ;;  %2297 = vmatpush3.msra.mxu1 %v1881_v53  ;;  %v1556_v40 = vsel %vm1554_vm5, %v1555_v20, %v3337_v44  ;;  %vm1425_vm6 = vcmp.lt.s32.totalorder %v3359_v5, 1  ;;  %v1416_v14 = vshll.u32 %v4015_v32, %v1407_v39  ;;  %v1417_v49 = vshrl.u32 %v4016_v35, %v1408_v27  ;;  %v1706_v44 = vld [vmem:[%s3962_s2 + $0x8] sm:$0xff]  ;;  %v1879_v53 = vld [vmem:[%s3964_s4 + $0x40] sm:$0xff] }
 0x16b   : > { %2239 = vmatprep.subr.mxu0 %v4024_v13  ;;  %2298 = vmatprep.subr.mxu1 %v4024_v13  ;;  %v1557_v10 = vadd.s32 %v1556_v40, %v1552_v22  ;;  %vm1426_vm7 = vcmp.lt.s32.totalorder %v3359_v5, 2  ;;  %v1257_v12 = vsub.s32 32, %v3377_v50  ;;  %v1412_v22 = vor.u32 %v1411_v4, %v1410_v6  ;;  %v1878_v6 = vld [vmem:[%s3964_s4 + $0x38] sm:$0xff] }
 0x16c   : > { %2240 = vmatpush3.msra.mxu0 %v1708_v8  ;;  %v1261_v8 = vsub.s32 4294967266, %v3377_v50  ;;  %v1415_v20 = vor.u32 %v1414_v48, %v1413_v38  ;;  %2299 = vmatpush3.msra.mxu1 %v1880_v33  ;;  %v1418_v0 = vor.u32 %v1417_v49, %v1416_v14  ;;  %v1419_v11 = vshll.u32 %v4016_v35, %v1407_v39 }
 0x16d   : > { %2241 = vmatprep.subr.mxu0 %v4024_v13  ;;  %v1558_v40 = vadd.s32 536870912, %v1557_v10  ;;  %v4026_v24 = vmov 920167782   ;;  %2300 = vmatprep.subr.mxu1 %v4024_v13  ;;  %vm1427_vm8 = vcmp.lt.s32.totalorder %v3359_v5, 3  ;;  %vm1428_vm9 = vcmp.lt.s32.totalorder %v3359_v5, 4 }
 0x16e   : > { %2242 = vmatpush3.msra.mxu0 %v1707_v37  ;;  %v1420_v60 = vshrl.u32 %v4026_v24, %v1408_v27  ;;  %v1422_v4 = vshll.u32 %v4026_v24, %v1407_v39  ;;  %v1423_v37 = vshrl.u32 %v4018_v45, %v1408_v27  ;;  %2301 = vmatpush3.msra.mxu1 %v1879_v53  ;;  %v1430_v14 = vsel %vm1428_vm9, %v1418_v0, 2102212464  ;;  %v1877_v39 = vld [vmem:[%s3964_s4 + $0x30] sm:$0xff] }
 0x16f   : > { %2243 = vmatprep.subr.mxu0 %v4024_v13  ;;  %v3421_v33 = vshrl.u32 %v1558_v40, 30  ;;  %v1409_v38 = vshrl.u32 %v4019_v46, %v1408_v27  ;;  %2302 = vmatprep.subr.mxu1 %v4024_v13  ;;  %v1259_v49 = vshrl.u32 %v3357_v34, %v1257_v12  ;;  %v1433_v40 = vsel %vm1425_vm6, %v1412_v22, %v1415_v20  ;;  %v1876_v34 = vld [vmem:[%s3964_s4 + $0x28] sm:$0xff] }
 0x170   : > { %2244 = vmatpush3.msra.mxu0 %v1706_v44  ;;  %v1421_v48 = vor.u32 %v1420_v60, %v1419_v11  ;;  %v1262_v44 = vadd.s32 127, %v1261_v8  ;;  %v1424_v53 = vor.u32 %v1423_v37, %v1422_v4  ;;  %2303 = vmatpush3.msra.mxu1 %v1878_v6  ;;  %v1437_v60 = vsel %vm1425_vm6, %v1415_v20, %v1418_v0 }
 0x171   : > { %4027 = vst [vmem:[#allocation9_spill] sm:$0xff] %v3421_v33  ;;  %2245 = vmatprep.subr.mxu0 %v4024_v13  ;;  %v1560_v27 = vshll.u32 %v3421_v33, 30  ;;  %v4028_v54 = vand.u32 2139095040, %v3228_v42  ;;  %2304 = vmatprep.subr.mxu1 %v4024_v13  ;;  %v1431_v12 = vsel %vm1427_vm8, %v1415_v20, %v1430_v14 }
 0x172   : > { %2246 = vmatpush3.msra.mxu0 %v1705_v31  ;;  %v1434_v11 = vsel %vm1428_vm9, %v1421_v48, 920167782  ;;  %v1429_v31 = vsel %vm1425_vm6, %v1409_v38, %v1412_v22  ;;  %v1438_v6 = vsel %vm1428_vm9, %v1424_v53, 1326507024  ;;  %2305 = vmatpush3.msra.mxu1 %v1877_v39  ;;  %v1875_v22 = vld [vmem:[%s3964_s4 + $0x20] sm:$0xff]  ;;  %vm445_vm9 = vweird.f32 %v2558_v18 }
 0x173   : > { %v1605_v1 = vshrl.u32 %v4028_v54, 23  ;;  %v1435_v8 = vsel %vm1427_vm8, %v1418_v0, %v1434_v11  ;;  %v3453_v54 = vsub.s32 %v1557_v10, %v1560_v27  ;;  %v1439_v37 = vsel %vm1427_vm8, %v1421_v48, %v1438_v6  ;;  %2306 = vmatprep.subr.mxu1 %v4024_v13 }
 0x174   : > { %v1436_v4 = vsel %vm1426_vm7, %v1433_v40, %v1435_v8  ;;  %v1258_v0 = vshll.u32 %v3262_v23, %v3377_v50  ;;  %v1440_v10 = vsel %vm1426_vm7, %v1437_v60, %v1439_v37  ;;  %2307 = vmatpush3.msra.mxu1 %v1876_v34  ;;  %v4030_v48 = vcvt.s32.f32 %v3317_v61  ;;  %v1874_v50 = vld [vmem:[%s3964_s4 + $0x18] sm:$0xff] }
 0x175   : > { %v2149_v33 = vadd.s32 4294967169, %v1605_v1  ;;  %v3468_v20 = vmul.u32.u64.low %v3363_v57, %v1436_v4  ;;  %v3469_v38 = vmul.u32.u64.high %v3363_v57, %v1436_v4, %v3468_v20  ;;  %v4029_v1 = vand.u32 2147483647, %v3319_v59  ;;  %2308 = vmatprep.subr.mxu1 %v4024_v13 }
 0x176   : > { %v1563_v39 = vsub.s32 0, %v3453_v54  ;;  %v3480_v53 = vmul.u32.u64.low %v3363_v57, %v1440_v10  ;;  %v3481_v23 = vmul.u32.u64.high %v3363_v57, %v1440_v10, %v3480_v53  ;;  %v3487_v40 = vor.u32 %v1259_v49, %v1258_v0  ;;  %2309 = vmatpush3.msra.mxu1 %v1875_v22 }
 0x177   : > { %v3476_v14 = vmul.f32 %v4030_v48, %v4029_v1  ;;  %v1263_v27 = vshll.u32 %v1262_v44, 23  ;;  %v1432_v61 = vsel %vm1426_vm7, %v1429_v31, %v1431_v12  ;;  %v1611_v59 = vadd.s32 1, %v2149_v33  ;;  %2310 = vmatprep.subr.mxu1 %v4024_v13 }
 0x178   : > { %v1553_v11 = vadd.s32 %v3336_v51, %v3344_v52  ;;  %v2146_v60 = vmin.u32 %v1563_v39, %v3453_v54  ;;  %v4031_v34 = vand.u32 2147483647, %v3228_v42  ;;  %v4032_v6 = vand.u32 2147483647, %v2558_v18  ;;  %2311 = vmatpush3.msra.mxu1 %v1874_v50 }
 0x179   : > { %v1451_v5 = vadd.s32 1, %v3469_v38  ;;  %vm1612_vm11 = vcmp.gt.s32.totalorder %v1611_v59, 0  ;;  %v439_v33 = vsub.s32 4, %v2691_v7  ;;  %v1448_v49 = vmul.u32 %v3363_v57, %v1432_v61  ;;  %2312 = vmatprep.subr.mxu1 %v4024_v13 }
 0x17a   : > { %v1608_v8 = vand.u32 8388607, %v4031_v34  ;;  %vm3498_vm10 = vcmp.le.f32.partialorder %v4032_v6, 0.7853982  ;;  %v1565_v52 = vclz %v2146_v60  ;;  %vm1450_vm2 = vc.u32 %v3481_v23, %v3468_v20 }
 0x17b   : > { %v441_v51 = vsel %vm3498_vm10, %v2558_v18, %v2849_v63  ;;  %v1613_v44 = vsel %vm1612_vm11, %v1611_v59, 0  ;;  %v3513_v31 = vor.u32 4788187, %v1263_v27  ;;  %v1452_v37 = vsel %vm1450_vm2, %v1451_v5, %v3469_v38 }
 0x17c   : > { %v1615_v22 = vand.u32 31, %v1613_v44  ;;  %v2147_v0 = vadd.s32 4294967294, %v1565_v52  ;;  %v1453_v10 = vadd.s32 %v1452_v37, %v1448_v49  ;;  %v1609_v63 = vor.u32 8388608, %v1608_v8 }
 0x17d   : > { %2428 = vsinq.f32 %v441_v51  ;;  %v3517_v1 = vshrl.u32 %v1613_v44, 5  ;;  %v440_v48 = vsel %vm355_vm4, %v439_v33, %v2691_v7 }
 0x17e   : > { %v1616_v57 = vsub.s32 32, %v1615_v22  ;;  %2430 = vcosq.f32 %v441_v51  ;;  %vm2148_vm5 = vcmp.lt.s32.totalorder %v2147_v0, 0  ;;  %v1454_v39 = vadd.s32 536870912, %v1453_v10 }
 0x17f   : > { %v1618_v53 = vshll.u32 %v4019_v46, %v1615_v22  ;;  %v1621_v50 = vshll.u32 %v4014_v15, %v1615_v22  ;;  %v1568_v38 = vsel %vm2148_vm5, 0, %v2147_v0  ;;  %v1624_v59 = vshll.u32 %v4015_v32, %v1615_v22 }
 0x180   : > { %v1619_v27 = vshrl.u32 %v4014_v15, %v1616_v57  ;;  %v1622_v61 = vshrl.u32 %v4015_v32, %v1616_v57  ;;  %v1569_v60 = vsub.s32 32, %v1568_v38  ;;  %v1573_v34 = vsub.s32 4294967266, %v1568_v38 }
 0x181   : > { %v3527_v8 = vshrl.u32 %v1454_v39, 30  ;;  %v1627_v7 = vshll.u32 %v4016_v35, %v1615_v22  ;;  %v1625_v5 = vshrl.u32 %v4016_v35, %v1616_v57  ;;  %v1628_v33 = vshrl.u32 %v4026_v24, %v1616_v57 }
 0x182   : > { %v1620_v6 = vor.u32 %v1619_v27, %v1618_v53  ;;  %v1630_v51 = vshll.u32 %v4026_v24, %v1615_v22  ;;  %v1574_v52 = vadd.s32 127, %v1573_v34  ;;  %v1623_v49 = vor.u32 %v1622_v61, %v1621_v50 }
 0x183   : > { %v1456_v15 = vshll.u32 %v3527_v8, 30  ;;  %v1631_v44 = vshrl.u32 %v4018_v45, %v1616_v57  ;;  %v1265_v32 = vand.u32 2147483647, %v3513_v31  ;;  %v1626_v37 = vor.u32 %v1625_v5, %v1624_v59 }
 0x184   : > { %v1629_v0 = vor.u32 %v1628_v33, %v1627_v7  ;;  %v3536_v39 = vshll.u32 %v1609_v63, 8  ;;  %v1571_v12 = vshrl.u32 %v1553_v11, %v1569_v60  ;;  %v442_v27 = vsel %vm3498_vm10, 0, %v440_v48 }
 0x185   : > { %v3538_v53 = vsub.s32 %v1453_v10, %v1456_v15  ;;  %v1632_v35 = vor.u32 %v1631_v44, %v1630_v51  ;;  %v1570_v24 = vshll.u32 %v3453_v54, %v1568_v38  ;;  %v1575_v22 = vshll.u32 %v1574_v52, 23 }
 0x186   : > { %v1617_v50 = vshrl.u32 %v4019_v46, %v1616_v57  ;;  %vm1633_vm4 = vcmp.lt.s32.totalorder %v3517_v1, 1  ;;  %vm1635_vm6 = vcmp.lt.s32.totalorder %v3517_v1, 3  ;;  %vm1636_vm7 = vcmp.lt.s32.totalorder %v3517_v1, 4 }
 0x187   : > { %v1459_v45 = vsub.s32 0, %v3538_v53  ;;  %v1641_v11 = vsel %vm1633_vm4, %v1620_v6, %v1623_v49  ;;  %v1638_v31 = vsel %vm1636_vm7, %v1626_v37, 2102212464  ;;  %v1642_v10 = vsel %vm1636_vm7, %v1629_v0, 920167782 }
 0x188   : > { %v1645_v63 = vsel %vm1633_vm4, %v1623_v49, %v1626_v37  ;;  %v1646_v61 = vsel %vm1636_vm7, %v1632_v35, 1326507024  ;;  %v1572_v4 = vor.u32 %v1571_v12, %v1570_v24  ;;  %vm1634_vm8 = vcmp.lt.s32.totalorder %v3517_v1, 2 }
 0x189   : > { %v2142_v48 = vmin.u32 %v1459_v45, %v3538_v53  ;;  %v1643_v46 = vsel %vm1635_vm6, %v1626_v37, %v1642_v10  ;;  %v1637_v57 = vsel %vm1633_vm4, %v1617_v50, %v1620_v6  ;;  %v1647_v59 = vsel %vm1635_vm6, %v1629_v0, %v1646_v61 }
 0x18a   : > { %v2429_v54 = vpop.eup %2428  ;;  %v1644_v38 = vsel %vm1634_vm8, %v1641_v11, %v1643_v46  ;;  %v446_v60 = vadd.s32 3, %v442_v27  ;;  %v1576_v7 = vor.u32 4788187, %v1575_v22  ;;  %v1639_v12 = vsel %vm1635_vm6, %v1623_v49, %v1638_v31 }
 0x18b   : > { %v2431_v34 = vpop.eup %2430  ;;  %v1461_v5 = vclz %v2142_v48  ;;  %v1648_v33 = vsel %vm1634_vm8, %v1645_v63, %v1647_v59  ;;  %v3565_v6 = vmul.u32.u64.low %v3536_v39, %v1644_v38  ;;  %v3566_v15 = vmul.u32.u64.high %v3536_v39, %v1644_v38, %v3565_v6 }
 0x18c   : > { %v3561_v51 = vmul.u32.u64.low %v3536_v39, %v1648_v33  ;;  %v3562_v52 = vmul.u32.u64.high %v3536_v39, %v1648_v33, %v3561_v51  ;;  %v1373_v44 = vxor.u32 2147483648, %v3476_v14  ;;  %v447_v0 = vand.u32 3, %v446_v60 }
 0x18d   : > { %v2143_v37 = vadd.s32 4294967294, %v1461_v5  ;;  %v450_v35 = vxor.u32 2147483648, %v2429_v54  ;;  %v4035_v27 = vcvt.s32.f32 %v3487_v40  ;;  %v1579_v24 = vcvt.s32.f32 %v1572_v4 }
 0x18e   : > { %v1640_v22 = vsel %vm1634_vm8, %v1637_v57, %v1639_v12  ;;  %vm979_vm10 = vcmp.lt.s32.totalorder %v2854_v36, 0  ;;  %v1577_v50 = vand.u32 2147483647, %v1576_v7  ;;  %v453_v45 = vxor.u32 2147483648, %v2431_v34 }
 0x18f   : > { %v3572_v49 = vmul.f32 %v4035_v27, %v1265_v32  ;;  %vm2144_vm11 = vcmp.lt.s32.totalorder %v2143_v37, 0  ;;  %v543_v11 = vsub.s32 4, %v2793_v41  ;;  %vm1658_vm2 = vc.u32 %v3562_v52, %v3565_v6 }
 0x190   : > { %v1464_v31 = vsel %vm2144_vm11, 0, %v2143_v37  ;;  %v1659_v40 = vadd.s32 1, %v3566_v15  ;;  %vm449_vm5 = vcmp.eq.s32.totalorder %v447_v0, 0  ;;  %vm1291_vm4 = vcmp.lt.s32.totalorder %v2894_v26, 0 }
 0x191   : > { %v1469_v1 = vsub.s32 4294967266, %v1464_v31  ;;  %v1656_v32 = vmul.u32 %v3536_v39, %v1640_v22  ;;  %v451_v10 = vsel %vm449_vm5, %v2431_v34, %v450_v35  ;;  %v4036_v63 = vand.u32 2147483647, %v2572_v30 }
 0x192   : > { %v1660_v4 = vsel %vm1658_vm2, %v1659_v40, %v3566_v15  ;;  %vm448_vm7 = vcmp.lt.s32.totalorder %v447_v0, 2  ;;  %vm452_vm8 = vcmp.eq.s32.totalorder %v447_v0, 2  ;;  %vm1187_vm11 = vcmp.lt.s32.totalorder %v3017_v56, 0 }
 0x193   : > { %vm3586_vm6 = vcmp.le.f32.partialorder %v4036_v63, 0.7853982  ;;  %v1465_v46 = vsub.s32 32, %v1464_v31  ;;  %v1470_v39 = vadd.s32 127, %v1469_v1  ;;  %v1661_v57 = vadd.s32 %v1660_v4, %v1656_v32 }
 0x194   : > { %v545_v48 = vsel %vm3586_vm6, %v2572_v30, %v3091_v55  ;;  %v454_v38 = vsel %vm452_vm8, %v453_v45, %v2429_v54  ;;  %v544_v60 = vsel %vm459_vm14, %v543_v11, %v2793_v41  ;;  %v647_v34 = vsub.s32 4, %v2660_v29 }
 0x195   : > { %v455_v59 = vsel %vm448_vm7, %v451_v10, %v454_v38  ;;  %2432 = vcosq.f32 %v545_v48  ;;  %v1580_v7 = vmul.f32 %v1579_v24, %v1577_v50  ;;  %v1662_v5 = vadd.s32 536870912, %v1661_v57 }
 0x196   : > { %v456_v12 = vsel %vm445_vm9, nan, %v455_v59  ;;  %v4039_v55 = vand.u32 2147483647, %v2555_v17  ;;  %v1449_v54 = vadd.s32 %v3468_v20, %v3481_v23  ;;  %2434 = vsinq.f32 %v545_v48  ;;  %v4049_v48 = vld [vmem:[#allocation3_spill] sm:$0xff] }
 0x197   : > { %2248 = vmatmul.mubr.f32.vlgmr.msra.gmra.mxu0 %v456_v12  ;;  %v648_v41 = vsel %vm563_vm3, %v647_v34, %v2660_v29  ;;  %vm4007_vm14 = vcmp.lt.s32.totalorder %v3102_v3, 0  ;;  %v1471_v51 = vshll.u32 %v1470_v39, 23  ;;  %v3618_v15 = vshrl.u32 %v1662_v5, 30 }
 0x198   : > { %vm3604_vm2 = vcmp.le.f32.partialorder %v4039_v55, 0.7853982  ;;  %2250 = vmatprep.mubr.msk.f32.mxu0 %vm2497_vm1, %v4024_v13  ;;  %v546_v20 = vsel %vm3586_vm6, 0, %v544_v60  ;;  %v4042_v23 = vxor.u32 2147483648, %v3223_v19  ;;  %v1467_v37 = vshrl.u32 %v1449_v54, %v1465_v46 }
 0x199   : > { %v649_v18 = vsel %vm3604_vm2, %v2555_v17, %v2844_v2  ;;  %v1269_v2 = vxor.u32 2147483648, %v3572_v49  ;;  %v1581_v0 = vxor.u32 2147483648, %v1580_v7  ;;  %v1664_v35 = vshll.u32 %v3618_v15, 30 }
 0x19a   : > { %v3629_v29 = vsel %vm979_vm10, %v4042_v23, %v3223_v19  ;;  %2436 = vcosq.f32 %v649_v18  ;;  %v650_v27 = vsel %vm3604_vm2, 0, %v648_v41  ;;  %v3638_v24 = vsel %vm1291_vm4, %v1373_v44, %v3476_v14  ;;  %v4053_v23 = vld [vmem:[#allocation2_spill] sm:$0xff] }
 0x19b   : > { %2438 = vsinq.f32 %v649_v18  ;;  %v1466_v22 = vshll.u32 %v3538_v53, %v1464_v31  ;;  %v550_v19 = vadd.s32 3, %v546_v20  ;;  %v4043_v50 = vand.u32 2147483647, %v2569_v28 }
 0x19c   : > { %v1472_v11 = vor.u32 4788187, %v1471_v51  ;;  %v3647_v40 = vsub.s32 %v1661_v57, %v1664_v35  ;;  %v751_v1 = vsub.s32 4, %v2730_v16  ;;  %v3657_v53 = vsel %vm1187_vm11, %v1269_v2, %v3572_v49 }
 0x19d   : > { %vm3643_vm3 = vcmp.le.f32.partialorder %v4043_v50, 0.7853982  ;;  %v1468_v44 = vor.u32 %v1467_v37, %v1466_v22  ;;  %v654_v31 = vadd.s32 3, %v650_v27  ;;  %v3661_v32 = vsel %vm4007_vm14, %v1581_v0, %v1580_v7 }
 0x19e   : > { %v753_v14 = vsel %vm3643_vm3, %v2569_v28, %v2948_v43  ;;  %v1667_v10 = vsub.s32 0, %v3647_v40  ;;  %v752_v63 = vsel %vm667_vm12, %v751_v1, %v2730_v16  ;;  %v551_v43 = vand.u32 3, %v550_v19 }
 0x19f   : > { %2440 = vcosq.f32 %v753_v14  ;;  %v754_v61 = vsel %vm3643_vm3, 0, %v752_v63  ;;  %v4046_v49 = vand.u32 2147483647, %v2775_v62  ;;  %v855_v46 = vsub.s32 4, %v4049_v48 }
 0x1a0   : > { %2442 = vsinq.f32 %v753_v14  ;;  %v1473_v39 = vand.u32 2147483647, %v1472_v11  ;;  %v3678_v57 = vadd.s32 %v3565_v6, %v3562_v52  ;;  %v2150_v16 = vmin.u32 %v1667_v10, %v3647_v40 }
 0x1a1   : > { %vm3671_vm9 = vcmp.le.f32.partialorder %v4046_v49, 0.7853982  ;;  %vm549_vm12 = vweird.f32 %v2572_v30  ;;  %v1475_v59 = vcvt.s32.f32 %v1468_v44  ;;  %v655_v60 = vand.u32 3, %v654_v31 }
 0x1a2   : > { %v857_v38 = vsel %vm3671_vm9, %v2775_v62, %v3216_v21  ;;  %v856_v34 = vsel %vm771_vm15, %v855_v46, %v4049_v48  ;;  %v2433_v7 = vpop.eup %2432  ;;  %v1669_v5 = vclz %v2150_v16  ;;  %v758_v52 = vadd.s32 3, %v754_v61 }
 0x1a3   : > { %2444 = vcosq.f32 %v857_v38  ;;  %v4050_v6 = vand.u32 2147483647, %v2714_v58  ;;  %vm552_vm6 = vcmp.lt.s32.totalorder %v551_v43, 2  ;;  %vm553_vm7 = vcmp.eq.s32.totalorder %v551_v43, 0  ;;  %v2435_v33 = vpop.eup %2434 }
 0x1a4   : > { %2446 = vsinq.f32 %v857_v38  ;;  %v557_v21 = vxor.u32 2147483648, %v2433_v7  ;;  %v3699_v54 = vmul.f32 %v1475_v59, %v1473_v39  ;;  %v2151_v41 = vadd.s32 4294967294, %v1669_v5 }
 0x1a5   : > { %vm3691_vm5 = vcmp.le.f32.partialorder %v4050_v6, 0.7853982  ;;  %vm556_vm15 = vcmp.eq.s32.totalorder %v551_v43, 2  ;;  %vm653_vm8 = vweird.f32 %v2555_v17  ;;  %v858_v18 = vsel %vm3671_vm9, 0, %v856_v34  ;;  %v4067_v34 = vld [vmem:[#allocation6_spill] sm:$0xff] }
 0x1a6   : > { %v961_v55 = vsel %vm3691_vm5, %v2714_v58, %v3211_v25  ;;  %v554_v51 = vxor.u32 2147483648, %v2435_v33  ;;  %v558_v20 = vsel %vm556_vm15, %v557_v21, %v2435_v33  ;;  %vm656_vm2 = vcmp.lt.s32.totalorder %v655_v60, 2 }
 0x1a7   : > { %v959_v2 = vsub.s32 4, %v4053_v23  ;;  %v2437_v37 = vpop.eup %2436  ;;  %vm2152_vm3 = vcmp.lt.s32.totalorder %v2151_v41, 0  ;;  %vm657_vm14 = vcmp.eq.s32.totalorder %v655_v60, 0  ;;  %v759_v0 = vand.u32 3, %v758_v52 }
 0x1a8   : > { %2448 = vcosq.f32 %v961_v55  ;;  %v2439_v25 = vpop.eup %2438  ;;  %v1672_v35 = vsel %vm2152_vm3, 0, %v2151_v41  ;;  %v555_v27 = vsel %vm553_vm7, %v2433_v7, %v554_v51  ;;  %v661_v22 = vxor.u32 2147483648, %v2437_v37  ;;  %v4057_v7 = vld [vmem:[#allocation5_spill] sm:$0xff] }
 0x1a9   : > { %v862_v19 = vadd.s32 3, %v858_v18  ;;  %v1677_v50 = vsub.s32 4294967266, %v1672_v35  ;;  %v559_v45 = vsel %vm552_vm6, %v555_v27, %v558_v20  ;;  %vm660_vm9 = vcmp.eq.s32.totalorder %v655_v60, 2 }
 0x1aa   : > { %vm757_vm15 = vweird.f32 %v2569_v28  ;;  %v560_v11 = vsel %vm549_vm12, nan, %v559_v45  ;;  %v658_v1 = vxor.u32 2147483648, %v2439_v25  ;;  %v662_v14 = vsel %vm660_vm9, %v661_v22, %v2439_v25 }
 0x1ab   : > { %v960_v44 = vsel %vm875_vm13, %v959_v2, %v4053_v23  ;;  %v1673_v10 = vsub.s32 32, %v1672_v35  ;;  %v1678_v63 = vadd.s32 127, %v1677_v50  ;;  %2251 = vmatmul.mubr.f32.gmra.mxu0 %v560_v11  ;;  %vm761_vm7 = vcmp.eq.s32.totalorder %v759_v0, 0  ;;  %v4062_v50 = vld [vmem:[#allocation7_spill] sm:$0xff] }
 0x1ac   : > { %v2441_v31 = vpop.eup %2440  ;;  %2450 = vsinq.f32 %v961_v55  ;;  %2253 = vmatprep.mubr.msk.f32.mxu0 %vm2497_vm1, %v4024_v13  ;;  %v659_v61 = vsel %vm657_vm14, %v2437_v37, %v658_v1  ;;  %vm764_vm6 = vcmp.eq.s32.totalorder %v759_v0, 2  ;;  %v863_v49 = vand.u32 3, %v862_v19 }
 0x1ad   : > { %v2443_v43 = vpop.eup %2442  ;;  %v765_v30 = vxor.u32 2147483648, %v2441_v31  ;;  %v1679_v4 = vshll.u32 %v1678_v63, 23  ;;  %v663_v48 = vsel %vm656_vm2, %v659_v61, %v662_v14  ;;  %v962_v39 = vsel %vm3691_vm5, 0, %v960_v44 }
 0x1ae   : > { %v762_v46 = vxor.u32 2147483648, %v2443_v43  ;;  %v664_v16 = vsel %vm653_vm8, nan, %v663_v48  ;;  %v4054_v59 = vand.u32 2147483647, %v2854_v36  ;;  %v1063_v5 = vsub.s32 4, %v4057_v7 }
 0x1af   : > { %v766_v38 = vsel %vm764_vm6, %v765_v30, %v2443_v43  ;;  %v1675_v60 = vshrl.u32 %v3678_v57, %v1673_v10  ;;  %2254 = vmatmul.mubr.f32.gmra.mxu0 %v664_v16  ;;  %vm760_vm14 = vcmp.lt.s32.totalorder %v759_v0, 2  ;;  %v1674_v21 = vshll.u32 %v3647_v40, %v1672_v35  ;;  %v4061_v35 = vld [vmem:[#allocation4_spill] sm:$0xff] }
 0x1b0   : > { %vm3723_vm13 = vcmp.le.f32.partialorder %v4054_v59, 0.7853982  ;;  %v2445_v52 = vpop.eup %2444  ;;  %v763_v6 = vsel %vm761_vm7, %v2441_v31, %v762_v46  ;;  %2256 = vmatprep.mubr.msk.f32.mxu0 %vm2497_vm1, %v4024_v13  ;;  %v966_v41 = vadd.s32 3, %v962_v39  ;;  %v1680_v18 = vor.u32 4788187, %v1679_v4  ;;  %v4066_v4 = vld [vmem:[#allocation8_spill] sm:$0xff] }
 0x1b1   : > { %v1065_v17 = vsel %vm3723_vm13, %v2854_v36, %v3629_v29  ;;  %v2447_v12 = vpop.eup %2446  ;;  %v767_v55 = vsel %vm760_vm14, %v763_v6, %v766_v38  ;;  %v869_v33 = vxor.u32 2147483648, %v2445_v52  ;;  %vm865_vm12 = vcmp.eq.s32.totalorder %v863_v49, 0 }
 0x1b2   : > { %v866_v57 = vxor.u32 2147483648, %v2447_v12  ;;  %vm868_vm5 = vcmp.eq.s32.totalorder %v863_v49, 2  ;;  %v768_v51 = vsel %vm757_vm15, nan, %v767_v55  ;;  %v1064_v29 = vsel %vm979_vm10, %v1063_v5, %v4057_v7 }
 0x1b3   : > { %v870_v20 = vsel %vm868_vm5, %v869_v33, %v2447_v12  ;;  %2452 = vcosq.f32 %v1065_v17  ;;  %vm1395_vm8 = vcmp.lt.s32.totalorder %v3111_v47, 0  ;;  %v1676_v40 = vor.u32 %v1675_v60, %v1674_v21  ;;  %2257 = vmatmul.mubr.f32.gmra.mxu0 %v768_v51 }
 0x1b4   : > { %vm864_vm2 = vcmp.lt.s32.totalorder %v863_v49, 2  ;;  %v867_v23 = vsel %vm865_vm12, %v2445_v52, %v866_v57  ;;  %2454 = vsinq.f32 %v1065_v17  ;;  %2259 = vmatprep.mubr.msk.f32.mxu0 %vm2497_vm1, %v4024_v13  ;;  %v967_v28 = vand.u32 3, %v966_v41 }
 0x1b5   : > { %v2449_v2 = vpop.eup %2448  ;;  %v871_v37 = vsel %vm864_vm2, %v867_v23, %v870_v20  ;;  %v4058_v0 = vand.u32 2147483647, %v2787_v9  ;;  %v1167_v27 = vsub.s32 4, %v4061_v35  ;;  %vm861_vm10 = vweird.f32 %v2775_v62 }
 0x1b6   : > { %v973_v22 = vxor.u32 2147483648, %v2449_v2  ;;  %v1066_v19 = vsel %vm3723_vm13, 0, %v1064_v29  ;;  %v1681_v11 = vand.u32 2147483647, %v1680_v18  ;;  %v872_v1 = vsel %vm861_vm10, nan, %v871_v37 }
 0x1b7   : > { %vm3747_vm3 = vcmp.le.f32.partialorder %v4058_v0, 0.7853982  ;;  %v1168_v14 = vsel %vm1083_vm0, %v1167_v27, %v4061_v35  ;;  %v1477_v44 = vxor.u32 2147483648, %v3699_v54  ;;  %v1683_v31 = vcvt.s32.f32 %v1676_v40  ;;  %2260 = vmatmul.mubr.f32.gmra.mxu0 %v872_v1 }
 0x1b8   : > { %v1169_v45 = vsel %vm3747_vm3, %v2787_v9, %v4062_v50  ;;  %v1170_v62 = vsel %vm3747_vm3, 0, %v1168_v14  ;;  %2262 = vmatprep.mubr.msk.f32.mxu0 %vm2497_vm1, %v4024_v13  ;;  %vm968_vm9 = vcmp.lt.s32.totalorder %v967_v28, 2  ;;  %vm972_vm15 = vcmp.eq.s32.totalorder %v967_v28, 2 }
 0x1b9   : > { %2456 = vcosq.f32 %v1169_v45  ;;  %v2451_v10 = vpop.eup %2450  ;;  %v1070_v63 = vadd.s32 3, %v1066_v19  ;;  %v4063_v43 = vand.u32 2147483647, %v3017_v56  ;;  %vm1603_vm0 = vcmp.lt.s32.totalorder %v3228_v42, 0 }
 0x1ba   : > { %2458 = vsinq.f32 %v1169_v45  ;;  %v970_v30 = vxor.u32 2147483648, %v2451_v10  ;;  %v974_v49 = vsel %vm972_vm15, %v973_v22, %v2451_v10  ;;  %v1271_v48 = vsub.s32 4, %v4066_v4 }
 0x1bb   : > { %vm3769_vm7 = vcmp.le.f32.partialorder %v4063_v43, 0.7853982  ;;  %v1684_v39 = vmul.f32 %v1683_v31, %v1681_v11  ;;  %vm969_vm6 = vcmp.eq.s32.totalorder %v967_v28, 0  ;;  %v1174_v16 = vadd.s32 3, %v1170_v62  ;;  %v4077_v31 = vld [vmem:[#allocation9_spill] sm:$0xff] }
 0x1bc   : > { %v1273_v46 = vsel %vm3769_vm7, %v3017_v56, %v3657_v53  ;;  %v971_v38 = vsel %vm969_vm6, %v2449_v2, %v970_v30  ;;  %v1272_v59 = vsel %vm1187_vm11, %v1271_v48, %v4066_v4  ;;  %v1375_v7 = vsub.s32 4, %v4067_v34 }
 0x1bd   : > { %2460 = vcosq.f32 %v1273_v46  ;;  %v1478_v5 = vsel %vm1395_vm8, %v1477_v44, %v3699_v54  ;;  %vm965_vm13 = vweird.f32 %v2714_v58  ;;  %v975_v53 = vsel %vm968_vm9, %v971_v38, %v974_v49 }
 0x1be   : > { %2462 = vsinq.f32 %v1273_v46  ;;  %v4068_v52 = vand.u32 2147483647, %v2894_v26  ;;  %v976_v6 = vsel %vm965_vm13, nan, %v975_v53  ;;  %v1071_v17 = vand.u32 3, %v1070_v63 }
 0x1bf   : > { %v1376_v12 = vsel %vm1291_vm4, %v1375_v7, %v4067_v34  ;;  %v1685_v58 = vxor.u32 2147483648, %v1684_v39  ;;  %2263 = vmatmul.mubr.f32.gmra.mxu0 %v976_v6  ;;  %vm1069_vm11 = vweird.f32 %v2854_v36  ;;  %v1274_v21 = vsel %vm3769_vm7, 0, %v1272_v59 }
 0x1c0   : > { %vm3790_vm14 = vcmp.le.f32.partialorder %v4068_v52, 0.7853982  ;;  %v2453_v55 = vpop.eup %2452  ;;  %2265 = vmatprep.mubr.msk.f32.mxu0 %vm2497_vm1, %v4024_v13  ;;  %v1175_v33 = vand.u32 3, %v1174_v16  ;;  %v4071_v41 = vand.u32 2147483647, %v3111_v47  ;;  %vm1173_vm12 = vweird.f32 %v2787_v9 }
 0x1c1   : > { %v1377_v54 = vsel %vm3790_vm14, %v2894_v26, %v3638_v24  ;;  %v1479_v24 = vsub.s32 4, %v3527_v8  ;;  %v2455_v57 = vpop.eup %2454  ;;  %v1077_v51 = vxor.u32 2147483648, %v2453_v55  ;;  %v1378_v20 = vsel %vm3790_vm14, 0, %v1376_v12 }
 0x1c2   : > { %2464 = vcosq.f32 %v1377_v54  ;;  %vm3808_vm4 = vcmp.le.f32.partialorder %v4071_v41, 0.7853982  ;;  %v1074_v40 = vxor.u32 2147483648, %v2455_v57  ;;  %vm1076_vm5 = vcmp.eq.s32.totalorder %v1071_v17, 2 }
 0x1c3   : > { %2466 = vsinq.f32 %v1377_v54  ;;  %v1481_v29 = vsel %vm3808_vm4, %v3111_v47, %v1478_v5  ;;  %v1278_v23 = vadd.s32 3, %v1274_v21  ;;  %v1686_v2 = vsel %vm1603_vm0, %v1685_v58, %v1684_v39 }
 0x1c4   : > { %2468 = vcosq.f32 %v1481_v29  ;;  %vm1072_vm2 = vcmp.lt.s32.totalorder %v1071_v17, 2  ;;  %vm1073_vm3 = vcmp.eq.s32.totalorder %v1071_v17, 0  ;;  %v1078_v37 = vsel %vm1076_vm5, %v1077_v51, %v2455_v57 }
 0x1c5   : > { %v1075_v0 = vsel %vm1073_vm3, %v2453_v55, %v1074_v40  ;;  %vm1177_vm10 = vcmp.eq.s32.totalorder %v1175_v33, 0  ;;  %v1382_v25 = vadd.s32 3, %v1378_v20  ;;  %v1480_v35 = vsel %vm1395_vm8, %v1479_v24, %v3527_v8 }
 0x1c6   : > { %v2457_v28 = vpop.eup %2456  ;;  %v1079_v22 = vsel %vm1072_vm2, %v1075_v0, %v1078_v37  ;;  %vm1180_vm9 = vcmp.eq.s32.totalorder %v1175_v33, 2  ;;  %vm1277_vm15 = vweird.f32 %v3017_v56  ;;  %2470 = vsinq.f32 %v1481_v29 }
 0x1c7   : > { %v2459_v27 = vpop.eup %2458  ;;  %v1181_v19 = vxor.u32 2147483648, %v2457_v28  ;;  %v1080_v50 = vsel %vm1069_vm11, nan, %v1079_v22  ;;  %v1279_v11 = vand.u32 3, %v1278_v23  ;;  %v4074_v1 = vand.u32 2147483647, %v3102_v3 }
 0x1c8   : > { %v1178_v45 = vxor.u32 2147483648, %v2459_v27  ;;  %2266 = vmatmul.mubr.f32.gmra.mxu0 %v1080_v50  ;;  %v1482_v44 = vsel %vm3808_vm4, 0, %v1480_v35  ;;  %v1583_v62 = vsub.s32 4, %v4077_v31  ;;  %vm1176_vm8 = vcmp.lt.s32.totalorder %v1175_v33, 2 }
 0x1c9   : > { %vm3829_vm7 = vcmp.le.f32.partialorder %v4074_v1, 0.7853982  ;;  %v1182_v8 = vsel %vm1180_vm9, %v1181_v19, %v2459_v27  ;;  %2268 = vmatprep.mubr.msk.f32.mxu0 %vm2497_vm1, %v4024_v13  ;;  %v1383_v43 = vand.u32 3, %v1382_v25  ;;  %vm4078_vm6 = vcmp.lt.s32.totalorder %v3102_v3, 0  ;;  %v1872_v1 = vld [vmem:[%s3964_s4 + $0x8] sm:$0xff] }
 0x1ca   : > { %v1585_v36 = vsel %vm3829_vm7, %v3102_v3, %v3661_v32  ;;  %v2461_v10 = vpop.eup %2460  ;;  %v1179_v63 = vsel %vm1177_vm10, %v2457_v28, %v1178_v45  ;;  %v1584_v4 = vsel %vm4078_vm6, %v1583_v62, %v4077_v31  ;;  %vm1284_vm13 = vcmp.eq.s32.totalorder %v1279_v11, 2  ;;  %v1871_v62 = vld [vmem:[%s3964_s4] sm:$0xff] }
 0x1cb   : > { %2472 = vcosq.f32 %v1585_v36  ;;  %v2463_v61 = vpop.eup %2462  ;;  %v1183_v30 = vsel %vm1176_vm8, %v1179_v63, %v1182_v8  ;;  %v1285_v49 = vxor.u32 2147483648, %v2461_v10  ;;  %v1486_v46 = vadd.s32 3, %v1482_v44 }
 0x1cc   : > { %2474 = vsinq.f32 %v1585_v36  ;;  %v1184_v32 = vsel %vm1173_vm12, nan, %v1183_v30  ;;  %v1282_v48 = vxor.u32 2147483648, %v2463_v61  ;;  %vm1281_vm14 = vcmp.eq.s32.totalorder %v1279_v11, 0  ;;  %v3895_v36 = vld [vmem:[%s3963_s3] ss:$0 sm:$0xff] }
 0x1cd   : > { %2269 = vmatmul.mubr.f32.gmra.mxu0 %v1184_v32  ;;  %v1286_v39 = vsel %vm1284_vm13, %v1285_v49, %v2463_v61  ;;  %v4079_v16 = vand.u32 2147483647, %v3228_v42  ;;  %v1687_v59 = vsub.s32 4, %v3618_v15  ;;  %vm1280_vm4 = vcmp.lt.s32.totalorder %v1279_v11, 2  ;;  %v1873_v11 = vld [vmem:[%s3964_s4 + $0x10] sm:$0xff] }
 0x1ce   : > { %2271 = vmatprep.mubr.msk.f32.mxu0 %vm2497_vm1, %v4024_v13  ;;  %v1283_v9 = vsel %vm1281_vm14, %v2461_v10, %v1282_v48  ;;  %v1586_v7 = vsel %vm3829_vm7, 0, %v1584_v4  ;;  %vm1388_vm12 = vcmp.eq.s32.totalorder %v1383_v43, 2  ;;  %v1487_v12 = vand.u32 3, %v1486_v46  ;;  %2313 = vmatpush3.msra.mxu1 %v1873_v11 }
 0x1cf   : > { %vm3850_vm11 = vcmp.le.f32.partialorder %v4079_v16, 0.7853982  ;;  %v2465_v34 = vpop.eup %2464  ;;  %v1287_v52 = vsel %vm1280_vm4, %v1283_v9, %v1286_v39  ;;  %v1688_v54 = vsel %vm1603_vm0, %v1687_v59, %v3618_v15  ;;  %vm1385_vm5 = vcmp.eq.s32.totalorder %v1383_v43, 0  ;;  %2314 = vmatprep.subr.mxu1 %v4024_v13 }
 0x1d0   : > { %v1689_v5 = vsel %vm3850_vm11, %v3228_v42, %v1686_v2  ;;  %v2467_v53 = vpop.eup %2466  ;;  %v1389_v60 = vxor.u32 2147483648, %v2465_v34  ;;  %v1288_v6 = vsel %vm1277_vm15, nan, %v1287_v52  ;;  %v1590_v55 = vadd.s32 3, %v1586_v7  ;;  %2315 = vmatpush3.msra.mxu1 %v1872_v1 }
 0x1d1   : > { %2476 = vcosq.f32 %v1689_v5  ;;  %v1386_v17 = vxor.u32 2147483648, %v2467_v53  ;;  %v2469_v58 = vpop.eup %2468  ;;  %2272 = vmatmul.mubr.f32.gmra.mxu0 %v1288_v6  ;;  %vm1384_vm2 = vcmp.lt.s32.totalorder %v1383_v43, 2  ;;  %vm1381_vm3 = vweird.f32 %v2894_v26  ;;  %2316 = vmatprep.subr.mxu1 %v4024_v13 }
 0x1d2   : > { %v1390_v21 = vsel %vm1388_vm12, %v1389_v60, %v2467_v53  ;;  %2478 = vsinq.f32 %v1689_v5  ;;  %2274 = vmatprep.mubr.msk.f32.mxu0 %vm2497_vm1, %v4024_v13  ;;  %v1493_v41 = vxor.u32 2147483648, %v2469_v58  ;;  %v1690_v18 = vsel %vm3850_vm11, 0, %v1688_v54  ;;  %2317 = vmatpush3.msra.mxu1 %v1871_v62 }
 0x1d3   : > { %v1387_v33 = vsel %vm1385_vm5, %v2465_v34, %v1386_v17  ;;  %v2471_v24 = vpop.eup %2470  ;;  %vm1492_vm0 = vcmp.eq.s32.totalorder %v1487_v12, 2  ;;  %v1591_v20 = vand.u32 3, %v1590_v55  ;;  %vm1489_vm10 = vcmp.eq.s32.totalorder %v1487_v12, 0 }
 0x1d4   : > { %v1391_v56 = vsel %vm1384_vm2, %v1387_v33, %v1390_v21  ;;  %v1490_v57 = vxor.u32 2147483648, %v2471_v24  ;;  %v1494_v51 = vsel %vm1492_vm0, %v1493_v41, %v2471_v24  ;;  %v1694_v29 = vadd.s32 3, %v1690_v18 }
 0x1d5   : > { %v1392_v15 = vsel %vm1381_vm3, nan, %v1391_v56  ;;  %vm1488_vm9 = vcmp.lt.s32.totalorder %v1487_v12, 2  ;;  %vm1485_vm15 = vweird.f32 %v3111_v47  ;;  %vm1596_vm7 = vcmp.eq.s32.totalorder %v1591_v20, 2 }
 0x1d6   : > { %2275 = vmatmul.mubr.f32.gmra.mxu0 %v1392_v15  ;;  %v1491_v23 = vsel %vm1489_vm10, %v2469_v58, %v1490_v57  ;;  %vm1593_vm8 = vcmp.eq.s32.totalorder %v1591_v20, 0  ;;  %v1695_v35 = vand.u32 3, %v1694_v29  ;;  %vm1592_vm6 = vcmp.lt.s32.totalorder %v1591_v20, 2 }
 0x1d7   : > { %2277 = vmatprep.mubr.msk.f32.mxu0 %vm2497_vm1, %v4024_v13  ;;  %v1495_v2 = vsel %vm1488_vm9, %v1491_v23, %v1494_v51  ;;  %vm1589_vm13 = vweird.f32 %v3102_v3  ;;  %vm1693_vm12 = vweird.f32 %v3228_v42 }
 0x1d8   : > { %v2473_v40 = vpop.eup %2472  ;;  %v1496_v28 = vsel %vm1485_vm15, nan, %v1495_v2  ;;  %vm1700_vm14 = vcmp.eq.s32.totalorder %v1695_v35, 2  ;;  %vm1697_vm11 = vcmp.eq.s32.totalorder %v1695_v35, 0  ;;  %vm1696_vm4 = vcmp.lt.s32.totalorder %v1695_v35, 2 }
 0x1d9   : > { %v2475_v26 = vpop.eup %2474  ;;  %v1597_v37 = vxor.u32 2147483648, %v2473_v40 }
 0x1da   : > { %v1594_v0 = vxor.u32 2147483648, %v2475_v26  ;;  %2278 = vmatmul.mubr.f32.gmra.mxu0 %v1496_v28 }
 0x1db   : > { %v1598_v25 = vsel %vm1596_vm7, %v1597_v37, %v2475_v26  ;;  %2280 = vmatprep.mubr.msk.f32.mxu0 %vm2497_vm1, %v4024_v13 }
 0x1dc   : > { %v1595_v27 = vsel %vm1593_vm8, %v2473_v40, %v1594_v0 }
 0x1dd   : > { %v1599_v19 = vsel %vm1592_vm6, %v1595_v27, %v1598_v25 }
 0x1de   : > { %v2477_v22 = vpop.eup %2476  ;;  %v1600_v50 = vsel %vm1589_vm13, nan, %v1599_v19 }
 0x1df   : > { %v1701_v47 = vxor.u32 2147483648, %v2477_v22  ;;  %v2479_v45 = vpop.eup %2478  ;;  %2281 = vmatmul.mubr.f32.gmra.mxu0 %v1600_v50 }
 0x1e0   : > { %2283 = vmatprep.mubr.msk.f32.mxu0 %vm2497_vm1, %v4024_v13  ;;  %v1698_v14 = vxor.u32 2147483648, %v2479_v45 }
 0x1e1   : > { %v1702_v8 = vsel %vm1700_vm14, %v1701_v47, %v2479_v45  ;;  %v2154_v47 = vld [vmem:[%s3965_s5] ss:$0 sm:$0xff] }
 0x1e2   : > { %v1699_v3 = vsel %vm1697_vm11, %v2477_v22, %v1698_v14 }
 0x1e3   : > { %v1703_v44 = vsel %vm1696_vm4, %v1699_v3, %v1702_v8 }
 0x1e4   : > { %v1704_v31 = vsel %vm1693_vm12, nan, %v1703_v44 }
 0x1e5   : > { %2284 = vmatmul.mubr.f32.gmra.mxu0 %v1704_v31 }
 0x257   : > { %v1794_v10 = vpop.f32.mrf.mxu0 }
 0x258   : > { %v1795_v63 = vadd.f32 %v3895_v36, %v1794_v10 }
 0x259   : > { %v2249_v43 = vpop.f32.mrf.mxu0 }
 0x25a   : > { %v1858_v42 = vmax.f32 %v1795_v63, 0.0 }
 0x25c   : > { %2319 = vmatmul.mubr.f32.vlgmr.msra.gmra.mxu1 %v1858_v42 }
 0x25d   : > { %2321 = vmatprep.mubr.msk.f32.mxu1 %vm2497_vm1, %v4024_v13 }
 0x26b   : > { %v1799_v61 = vpop.f32.mrf.mxu0 }
 0x26c   : > { %v1800_v30 = vadd.f32 %v3895_v36, %v1799_v61 }
 0x26d   : > { %v2252_v49 = vpop.f32.mrf.mxu0 }
 0x26e   : > { %v1859_v4 = vmax.f32 %v1800_v30, 0.0 }
 0x26f   : > { %v1804_v32 = vpop.f32.mrf.mxu0 }
 0x270   : > { %v1805_v48 = vadd.f32 %v3895_v36, %v1804_v32  ;;  %2322 = vmatmul.mubr.f32.gmra.mxu1 %v1859_v4 }
 0x271   : > { %v2255_v46 = vpop.f32.mrf.mxu0  ;;  %2324 = vmatprep.mubr.msk.f32.mxu1 %vm2497_vm1, %v4024_v13 }
 0x272   : > { %v1860_v39 = vmax.f32 %v1805_v48, 0.0 }
 0x273   : > { %v1809_v16 = vpop.f32.mrf.mxu0 }
 0x274   : > { %v1810_v38 = vadd.f32 %v3895_v36, %v1809_v16  ;;  %2325 = vmatmul.mubr.f32.gmra.mxu1 %v1860_v39 }
 0x275   : > { %v2258_v59 = vpop.f32.mrf.mxu0  ;;  %2327 = vmatprep.mubr.msk.f32.mxu1 %vm2497_vm1, %v4024_v13 }
 0x276   : > { %v1861_v34 = vmax.f32 %v1810_v38, 0.0 }
 0x277   : > { %v1814_v9 = vpop.f32.mrf.mxu0 }
 0x278   : > { %v1815_v7 = vadd.f32 %v3895_v36, %v1814_v9  ;;  %2328 = vmatmul.mubr.f32.gmra.mxu1 %v1861_v34 }
 0x279   : > { %v2261_v5 = vpop.f32.mrf.mxu0  ;;  %2330 = vmatprep.mubr.msk.f32.mxu1 %vm2497_vm1, %v4024_v13 }
 0x27a   : > { %v1862_v53 = vmax.f32 %v1815_v7, 0.0 }
 0x27c   : > { %2331 = vmatmul.mubr.f32.gmra.mxu1 %v1862_v53 }
 0x27d   : > { %2333 = vmatprep.mubr.msk.f32.mxu1 %vm2497_vm1, %v4024_v13 }
 0x27f   : > { %v1819_v52 = vpop.f32.mrf.mxu0 }
 0x280   : > { %v1820_v60 = vadd.f32 %v3895_v36, %v1819_v52 }
 0x281   : > { %v2264_v6 = vpop.f32.mrf.mxu0 }
 0x282   : > { %v1863_v17 = vmax.f32 %v1820_v60, 0.0 }
 0x284   : > { %2334 = vmatmul.mubr.f32.gmra.mxu1 %v1863_v17 }
 0x285   : > { %2336 = vmatprep.mubr.msk.f32.mxu1 %vm2497_vm1, %v4024_v13 }
 0x288   : > { %v1824_v12 = vpop.f32.mrf.mxu0 }
 0x289   : > { %v1825_v54 = vadd.f32 %v3895_v36, %v1824_v12 }
 0x28a   : > { %v2267_v58 = vpop.f32.mrf.mxu0 }
 0x28b   : > { %v1864_v21 = vmax.f32 %v1825_v54, 0.0 }
 0x28d   : > { %v1829_v55 = vpop.f32.mrf.mxu0  ;;  %2337 = vmatmul.mubr.f32.gmra.mxu1 %v1864_v21 }
 0x28e   : > { %v1830_v33 = vadd.f32 %v3895_v36, %v1829_v55  ;;  %2339 = vmatprep.mubr.msk.f32.mxu1 %vm2497_vm1, %v4024_v13 }
 0x28f   : > { %v2270_v41 = vpop.f32.mrf.mxu0 }
 0x290   : > { %v1865_v56 = vmax.f32 %v1830_v33, 0.0 }
 0x291   : > { %v1834_v18 = vpop.f32.mrf.mxu0 }
 0x292   : > { %v1835_v24 = vadd.f32 %v3895_v36, %v1834_v18  ;;  %2340 = vmatmul.mubr.f32.gmra.mxu1 %v1865_v56 }
 0x293   : > { %v2273_v15 = vpop.f32.mrf.mxu0  ;;  %2342 = vmatprep.mubr.msk.f32.mxu1 %vm2497_vm1, %v4024_v13 }
 0x294   : > { %v1866_v57 = vmax.f32 %v1835_v24, 0.0 }
 0x296   : > { %v1839_v51 = vpop.f32.mrf.mxu0  ;;  %2343 = vmatmul.mubr.f32.gmra.mxu1 %v1866_v57 }
 0x297   : > { %v1840_v20 = vadd.f32 %v3895_v36, %v1839_v51  ;;  %2345 = vmatprep.mubr.msk.f32.mxu1 %vm2497_vm1, %v4024_v13 }
 0x298   : > { %v2276_v29 = vpop.f32.mrf.mxu0 }
 0x299   : > { %v1867_v40 = vmax.f32 %v1840_v20, 0.0 }
 0x29a   : > { %v1844_v23 = vpop.f32.mrf.mxu0 }
 0x29b   : > { %2346 = vmatmul.mubr.f32.gmra.mxu1 %v1867_v40  ;;  %v1845_v26 = vadd.f32 %v3895_v36, %v1844_v23 }
 0x29c   : > { %2348 = vmatprep.mubr.msk.f32.mxu1 %vm2497_vm1, %v4024_v13  ;;  %v2279_v2 = vpop.f32.mrf.mxu0 }
 0x29d   : > { %v1868_v37 = vmax.f32 %v1845_v26, 0.0 }
 0x29f   : > { %v1849_v28 = vpop.f32.mrf.mxu0  ;;  %2349 = vmatmul.mubr.f32.gmra.mxu1 %v1868_v37 }
 0x2a0   : > { %v1850_v0 = vadd.f32 %v3895_v36, %v1849_v28  ;;  %2351 = vmatprep.mubr.msk.f32.mxu1 %vm2497_vm1, %v4024_v13 }
 0x2a1   : > { %v2282_v25 = vpop.f32.mrf.mxu0 }
 0x2a2   : > { %v1869_v35 = vmax.f32 %v1850_v0, 0.0 }
 0x2a4   : > { %2352 = vmatmul.mubr.f32.gmra.mxu1 %v1869_v35 }
 0x2a5   : > { %v1854_v27 = vpop.f32.mrf.mxu0  ;;  %2354 = vmatprep.mubr.msk.f32.mxu1 %vm2497_vm1, %v4024_v13 }
 0x2a6   : > { %v1855_v22 = vadd.f32 %v3895_v36, %v1854_v27 }
 0x2a7   : > { %v2285_v19 = vpop.f32.mrf.mxu0 }
 0x2a8   : > { %v1870_v50 = vmax.f32 %v1855_v22, 0.0 }
 0x2aa   : > { %2355 = vmatmul.mubr.f32.gmra.mxu1 %v1870_v50 }
 0x31c   : > { %v1960_v13 = vpop.f32.mrf.mxu1 }
 0x31d   : > { %v1961_v45 = vadd.f32 %v2154_v47, %v1960_v13 }
 0x31e   : > { %v2320_v11 = vpop.f32.mrf.mxu1 }
 0x31f   : > { %2024 = vst [vmem:[%s3942_s15] sm:$0xff] %v1961_v45 }
 0x330   : > { %v1965_v1 = vpop.f32.mrf.mxu1 }
 0x331   : > { %v1966_v14 = vadd.f32 %v2154_v47, %v1965_v1 }
 0x332   : > { %v2323_v8 = vpop.f32.mrf.mxu1 }
 0x333   : > { %2025 = vst [vmem:[%s3942_s15 + $0x8] sm:$0xff] %v1966_v14 }
 0x334   : > { %v1970_v3 = vpop.f32.mrf.mxu1 }
 0x335   : > { %v1971_v44 = vadd.f32 %v2154_v47, %v1970_v3 }
 0x336   : > { %v2326_v31 = vpop.f32.mrf.mxu1 }
 0x337   : > { %2026 = vst [vmem:[%s3942_s15 + $0x10] sm:$0xff] %v1971_v44 }
 0x338   : > { %v1975_v62 = vpop.f32.mrf.mxu1 }
 0x339   : > { %v1976_v36 = vadd.f32 %v2154_v47, %v1975_v62 }
 0x33a   : > { %v2329_v10 = vpop.f32.mrf.mxu1 }
 0x33b   : > { %2027 = vst [vmem:[%s3942_s15 + $0x18] sm:$0xff] %v1976_v36 }
 0x33c   : > { %v1980_v63 = vpop.f32.mrf.mxu1 }
 0x33d   : > { %v1981_v43 = vadd.f32 %v2154_v47, %v1980_v63 }
 0x33e   : > { %v2332_v42 = vpop.f32.mrf.mxu1 }
 0x33f   : > { %2028 = vst [vmem:[%s3942_s15 + $0x20] sm:$0xff] %v1981_v43 }
 0x344   : > { %v1985_v61 = vpop.f32.mrf.mxu1 }
 0x345   : > { %v1986_v30 = vadd.f32 %v2154_v47, %v1985_v61 }
 0x346   : > { %v2335_v49 = vpop.f32.mrf.mxu1 }
 0x347   : > { %2029 = vst [vmem:[%s3942_s15 + $0x28] sm:$0xff] %v1986_v30 }
 0x34d   : > { %v1990_v4 = vpop.f32.mrf.mxu1 }
 0x34e   : > { %v1991_v32 = vadd.f32 %v2154_v47, %v1990_v4 }
 0x34f   : > { %v2338_v48 = vpop.f32.mrf.mxu1 }
 0x350   : > { %2030 = vst [vmem:[%s3942_s15 + $0x30] sm:$0xff] %v1991_v32 }
 0x352   : > { %v1995_v46 = vpop.f32.mrf.mxu1 }
 0x353   : > { %v1996_v39 = vadd.f32 %v2154_v47, %v1995_v46 }
 0x354   : > { %v2341_v16 = vpop.f32.mrf.mxu1 }
 0x355   : > { %2031 = vst [vmem:[%s3942_s15 + $0x38] sm:$0xff] %v1996_v39 }
 0x356   : > { %v2000_v38 = vpop.f32.mrf.mxu1 }
 0x357   : > { %v2001_v59 = vadd.f32 %v2154_v47, %v2000_v38 }
 0x358   : > { %v2344_v34 = vpop.f32.mrf.mxu1 }
 0x359   : > { %2032 = vst [vmem:[%s3942_s15 + $0x40] sm:$0xff] %v2001_v59 }
 0x35b   : > { %v2005_v9 = vpop.f32.mrf.mxu1 }
 0x35c   : > { %v2006_v7 = vadd.f32 %v2154_v47, %v2005_v9 }
 0x35d   : > { %v2347_v5 = vpop.f32.mrf.mxu1 }
 0x35e   : > { %2033 = vst [vmem:[%s3942_s15 + $0x48] sm:$0xff] %v2006_v7 }
 0x35f   : > { %v2010_v53 = vpop.f32.mrf.mxu1 }
 0x360   : > { %v2011_v52 = vadd.f32 %v2154_v47, %v2010_v53 }
 0x361   : > { %v2350_v60 = vpop.f32.mrf.mxu1 }
 0x362   : > { %2034 = vst [vmem:[%s3942_s15 + $0x50] sm:$0xff] %v2011_v52 }
 0x364   : > { %v2015_v6 = vpop.f32.mrf.mxu1 }
 0x365   : > { %v2016_v17 = vadd.f32 %v2154_v47, %v2015_v6 }
 0x366   : > { %v2353_v12 = vpop.f32.mrf.mxu1 }
 0x367   : > { %2035 = vst [vmem:[%s3942_s15 + $0x58] sm:$0xff] %v2016_v17 }
 0x36a   : > { %v2020_v54 = vpop.f32.mrf.mxu1 }
 0x36b   : > { %v2021_v58 = vadd.f32 %v2154_v47, %v2020_v54 }
 0x36c   : > { %v2356_v21 = vpop.f32.mrf.mxu1 }
 0x36d   : > { %2036 = vst [vmem:[%s3942_s15 + $0x60] sm:$0xff] %v2021_v58 }
 0x36e PF: > { %s16_s21 = sadd.s32 1, %s2487_s21  }
 0x36f   : > { %p13_p4 = scmp.ge.s32.totalorder %s16_s21, 4  }
 0x371   :  { %15 = sbr.rel (!%p13_p4) target bundleno = 1 (0x1), region = 74 }

</bundles_post_ra>
